<compile_context>
chip_gen: v5e
topology: v5e:2x2
jax: 0.10.0
libtpu: 0.0.40
codegen_flags: <defaults>
</compile_context>

<pallas_src>
import math
import functools
import jax
import jax.numpy as jnp
from jax import lax
from jax.experimental import pallas as pl
from jax.experimental.pallas import tpu as pltpu

# ----------------------------- configuration --------------------------------
PAD = 0                      # Constants.PAD
BATCH = 2
SEQ_FULL = 17                # input_seq length before [:, :-1] trim
MAX_LEN = SEQ_FULL - 1       # 16
USER_NUM = 128
D_MODEL = 32
POS_DIM = 8
N_HEADS = 8
D_K = 16
D_V = 16
TIME_STEPS = 8               # time_step_split
CAS_NUM = 64
STEP_LEN = 5
DYN_KEYS = [10, 20, 30, 40, 50, 60, 70, 80]   # timestamps keys of dynamic_node_emb_dict

D_FULL = D_MODEL + POS_DIM   # 40
HK = N_HEADS * D_K           # 128 (stacked-head feature width)
HL = N_HEADS * MAX_LEN       # 128 (stacked-head key width)

# keep grid=(B,) parallel so the two cascades shard across v7x's 2 TensorCores;
# on v5e/v6e the 2-step serial grid only costs ~0.7 us total.
_CPARAMS = pltpu.CompilerParams(dimension_semantics=("parallel",))


# ----------------------------- fused Pallas kernel ---------------------------
def dyhgcn_fused_kernel(te_ref, dy_ref, kbias_ref, outb_ref,
                        pos_ref, blk_ref, wqkv_ref, wo_ref, w12_ref, wlin_ref,
                        vec_ref, o_ref):
    f32 = jnp.float32
    bf16 = jnp.bfloat16

    # ---------------- TimeAttention (tiny; VPU/XLU) ----------------
    te = te_ref[0]                                   # (L, D)
    dy = dy_ref[0]                                   # (L, T, D)
    scale_t = 1.0 / math.sqrt(D_MODEL)
    score = jnp.sum(te[:, None, :] * dy, axis=-1) * scale_t          # (L, T)
    score = score - jnp.max(score, axis=-1, keepdims=True)
    e = jnp.exp(score)
    alpha = e * pl.reciprocal(jnp.sum(e, axis=-1, keepdims=True), approx=True)
    dyemb = jnp.sum(alpha[:, :, None] * dy, axis=1)                  # (L, D)

    # concat positional embedding (dropout = identity in eval mode)
    x = jnp.concatenate([dyemb, pos_ref[...]], axis=-1)              # (L, Dm) f32
    x_bf = x.astype(bf16)

    # ---------------- TransformerBlock: stacked-head attention ----------------
    blk = blk_ref[...]                               # (HL, HK) bf16 0/1 block-diag select

    # fused Q|K|V projection in one bf16 MXU pass (f32 accumulate)
    qkv = jnp.dot(x_bf, wqkv_ref[...], preferred_element_type=f32)   # (L, 3*HK)
    Q = qkv[:, :HK].astype(bf16)
    K = qkv[:, HK:2 * HK].astype(bf16)
    V = qkv[:, 2 * HK:].astype(bf16)

    # Stacked-head K/V: sublane replication + precomputed block-diagonal select.
    # Row h*L+k of k_stack/v_stack holds K[k]/V[k] restricted to head h's features.
    k_stack = jnp.concatenate([K] * N_HEADS, axis=0) * blk           # (HL, HK)
    v_stack = jnp.concatenate([V] * N_HEADS, axis=0) * blk           # (HL, HK)

    # all-head scores in one MXU pass: s[q, h*L+k] = Q_h[q] . K_h[k]
    s = lax.dot_general(Q, k_stack, (((1,), (1,)), ((), ())),
                        preferred_element_type=f32)                  # (L, HL)
    s = s * (1.0 / math.sqrt(D_K)) + kbias_ref[0]                    # pad-key bias (1, HL)

    # Per-head softmax.  Subtracting the global row max (over all 128 stacked-head
    # columns) is valid because the pad bias is a large *finite* negative value
    # (exp underflows to 0) and every row has at least one unmasked key.
    s = s - jnp.max(s, axis=-1, keepdims=True)
    es = jnp.exp(s)
    # blk doubles as the per-head group-sum operator (d_k == max_len).
    denom = jnp.dot(es.astype(bf16), blk, preferred_element_type=f32)  # (L, HL)
    p_att = (es * pl.reciprocal(denom, approx=True)).astype(bf16)      # (L, HL)

    vatt = jnp.dot(p_att, v_stack, preferred_element_type=f32)         # (L, HK)
    attn_out = jnp.dot(vatt.astype(bf16), wo_ref[...],
                       preferred_element_type=f32)                     # (L, Dm)

    # packed LN/FFN vectors: g1, be1, g2, be2, b1, b2
    vec = vec_ref[...]                                                 # (6, Dm) f32
    g1, be1, g2, be2, b1, b2 = (vec[0:1], vec[1:2], vec[2:3],
                                vec[3:4], vec[4:5], vec[5:6])

    # residual + LayerNorm 1 (f32 residual path)
    x1 = x + attn_out
    mu = jnp.mean(x1, axis=-1, keepdims=True)
    var = jnp.mean((x1 - mu) ** 2, axis=-1, keepdims=True)
    xn = (x1 - mu) * lax.rsqrt(var + 1e-5) * g1 + be1

    # FFN + residual + LayerNorm 2
    h1 = jnp.maximum(jnp.dot(xn.astype(bf16), w12_ref[0],
                             preferred_element_type=f32) + b1, 0.0)
    y = jnp.dot(h1.astype(bf16), w12_ref[1], preferred_element_type=f32) + b2 + xn
    mu2 = jnp.mean(y, axis=-1, keepdims=True)
    var2 = jnp.mean((y - mu2) ** 2, axis=-1, keepdims=True)
    yn = (y - mu2) * lax.rsqrt(var2 + 1e-5) * g2 + be2

    # output head; linear bias + previous-user -1000 mask are pre-folded into outb
    logits = jnp.dot(yn.astype(bf16), wlin_ref[...], preferred_element_type=f32)
    o_ref[0] = logits + outb_ref[0]


# ----------------------------- Pallas wrapper --------------------------------
def _full_spec(arr):
    nd = arr.ndim
    return pl.BlockSpec(arr.shape, lambda b, nd=nd: (0,) * nd)


def dyhgcn_fused_pallas(t_embed, dyuser_emb, pos_rows, maskf, input_seq, p):
    B, L, D = t_embed.shape
    T = dyuser_emb.shape[2]
    U = p['w_lin'].shape[1]
    assert D_K == D_V == L, "stacked-head layout reuses one block-diag select (d_k == d_v == max_len)"
    bf16 = jnp.bfloat16

    # -------- per-batch inputs --------
    # pad-key additive bias replicated across the N_HEADS stacked groups: (B, 1, H*L)
    key_bias = jnp.tile(maskf * (-1e9), (1, 1, N_HEADS)).astype(jnp.float32)
    # linear bias + previous-user -1000 mask folded into one lane-dense term: (B, L, U)
    users = jnp.arange(U, dtype=jnp.int32)
    eq = (input_seq.astype(jnp.int32)[..., None] == users[None, None, :])
    member = (jnp.cumsum(eq.astype(jnp.int32), axis=1) > 0) | (users[None, None, :] == 0)
    out_bias = (p['b_lin'] + jnp.where(member, -1000.0, 0.0)).astype(jnp.float32)

    # -------- resident weights / constants (constant index_map => DMA'd once) -----
    wqkv = jnp.concatenate([p['wq'], p['wk'], p['wv']], axis=1).astype(bf16)   # (Dm, 3*HK)
    wo = p['wo'].astype(bf16)                                                  # (HK, Dm)
    w12 = jnp.stack([p['w1'], p['w2']], axis=0).astype(bf16)                   # (2, Dm, Dm)
    wlin = p['w_lin'].astype(bf16)                                             # (Dm, U)
    vecs = jnp.concatenate([p['g1'], p['be1'], p['g2'], p['be2'],
                            p['b1'], p['b2']], axis=0).astype(jnp.float32)     # (6, Dm)
    # block-diagonal head select == per-head group-sum operator (d_k == d_v == L)
    grp = jnp.arange(HL, dtype=jnp.int32) // L
    blk = (grp[:, None] == grp[None, :]).astype(bf16)                          # (HL, HK)

    args = (t_embed.astype(jnp.float32), dyuser_emb.astype(jnp.float32),
            key_bias, out_bias,
            pos_rows.astype(jnp.float32), blk, wqkv, wo, w12, wlin, vecs)

    in_specs = [pl.BlockSpec((1, L, D), lambda b: (b, 0, 0)),
                pl.BlockSpec((1, L, T, D), lambda b: (b, 0, 0, 0)),
                pl.BlockSpec((1, 1, N_HEADS * L), lambda b: (b, 0, 0)),
                pl.BlockSpec((1, L, U), lambda b: (b, 0, 0))] + \
               [_full_spec(a) for a in args[4:]]

    return pl.pallas_call(
        dyhgcn_fused_kernel,
        out_shape=jax.ShapeDtypeStruct((B, L, U), jnp.float32),
        grid=(B,),
        in_specs=in_specs,
        out_specs=pl.BlockSpec((1, L, U), lambda b: (b, 0, 0)),
        compiler_params=_CPARAMS,
    )(*args)


# ----------------------------- pure-JAX references ---------------------------
def time_attention_ref(te, dy):
    scale = 1.0 / math.sqrt(te.shape[-1])
    score = jnp.sum(te[:, :, None, :] * dy, axis=-1) * scale
    alpha = jax.nn.softmax(score, axis=-1)
    return jnp.sum(alpha[..., None] * dy, axis=2)


def transformer_block_ref(x, maskf, p):
    B, L, Dm = x.shape
    key_bias = maskf * (-1e9)                                        # (B, 1, L)
    Q = x @ p['wq']; K = x @ p['wk']; V = x @ p['wv']
    scale = 1.0 / math.sqrt(D_K)
    attn_out = jnp.zeros((B, L, Dm), jnp.float32)
    for h in range(N_HEADS):
        qh = Q[..., h * D_K:(h + 1) * D_K]
        kh = K[..., h * D_K:(h + 1) * D_K]
        vh = V[..., h * D_V:(h + 1) * D_V]
        s = jnp.einsum('bqd,bkd->bqk', qh, kh) * scale + key_bias
        a = jax.nn.softmax(s, axis=-1)
        attn_out = attn_out + jnp.einsum('bqk,bkd->bqd', a, vh) @ p['wo'][h * D_V:(h + 1) * D_V, :]
    x1 = x + attn_out
    mu = jnp.mean(x1, axis=-1, keepdims=True)
    var = jnp.mean((x1 - mu) ** 2, axis=-1, keepdims=True)
    xn = (x1 - mu) * lax.rsqrt(var + 1e-5) * p['g1'] + p['be1']
    h1 = jnp.maximum(xn @ p['w1'] + p['b1'], 0.0)
    y = h1 @ p['w2'] + p['b2'] + xn
    mu2 = jnp.mean(y, axis=-1, keepdims=True)
    var2 = jnp.mean((y - mu2) ** 2, axis=-1, keepdims=True)
    return (y - mu2) * lax.rsqrt(var2 + 1e-5) * p['g2'] + p['be2']


def output_ref(att, seq, p):
    logits = att @ p['w_lin'] + p['b_lin']
    U = p['w_lin'].shape[1]
    users = jnp.arange(U)[None, None, :]
    eq = (seq[..., None].astype(jnp.int32) == users)
    member = jnp.cumsum(eq.astype(jnp.int32), axis=1) > 0
    member = member | (users == 0)
    return logits + jnp.where(member, -1000.0, 0.0)


# ----------------------------- JAX glue (no host sync) -----------------------
def compute_dyemb_timestamp_jax(input_timestamp, keys_arr, step_len=STEP_LEN):
    """Vectorized replica of DyHGCN.forward's chunk/dict-lookup bucketing loop."""
    B, L = input_timestamp.shape
    n_chunks = -(-L // step_len)
    pad = n_chunks * step_len - L
    ts = jnp.pad(input_timestamp, ((0, 0), (0, pad)), constant_values=-1)
    chunks = ts.reshape(B, n_chunks, step_len).transpose(1, 0, 2).reshape(n_chunks, B * step_len)
    n_keys = keys_arr.shape[0]
    init = keys_arr[-1].astype(jnp.int32)                            # latest timestamp key

    def step(carry, chunk):
        valid = chunk >= 0
        cmax = jnp.max(jnp.where(valid, chunk, jnp.iinfo(jnp.int32).min))
        new = jnp.where(jnp.any(valid), cmax, carry)
        idx = jnp.searchsorted(keys_arr, new, side='right') - 1
        res = jnp.where(idx < 0, n_keys - 1, idx).astype(jnp.int32)  # fallback matches torch loop
        return new, res

    _, res_per_chunk = lax.scan(step, init, chunks)                  # (n_chunks,)
    per_pos = jnp.repeat(res_per_chunk, step_len)[:L]                # (L,)
    return jnp.broadcast_to(per_pos[None, :], (B, L)).astype(jnp.int32)


@functools.partial(jax.jit, static_argnames=('use_pallas',))
def dyhgcn_forward(params, input_seq, input_timestamp, use_pallas=True):
    input_seq = input_seq[:, :-1]
    input_timestamp = input_timestamp[:, :-1]
    B, L = input_seq.shape
    mask_pad = (input_seq == PAD)

    # positional embedding rows (dropout = identity in eval)
    pos_rows = params['pos_emb'][:L]                                 # (L, pos_dim)

    # dynamic node embeddings (synthesized; see TODO(synk) above)
    dyn_keys = sorted(params['dyn_emb'].keys())
    keys_arr = jnp.asarray(dyn_keys, dtype=jnp.int32)
    dyemb_ts = compute_dyemb_timestamp_jax(input_timestamp, keys_arr)            # (B, L)
    dyuser_emb = jnp.stack([params['dyn_emb'][k][input_seq] for k in dyn_keys], axis=2)  # (B,L,T,D)
    t_embed = params['time_emb'][dyemb_ts]                                        # (B, L, D)

    maskf = mask_pad.astype(jnp.float32)[:, None, :]                 # (B, 1, L)

    if use_pallas:
        output = dyhgcn_fused_pallas(t_embed, dyuser_emb, pos_rows, maskf, input_seq, params)
    else:
        dyemb = time_attention_ref(t_embed, dyuser_emb)
        order_embed = jnp.broadcast_to(pos_rows[None], (B, L, POS_DIM))
        final_embed = jnp.concatenate([dyemb, order_embed], axis=-1)
        att_out = transformer_block_ref(final_embed, maskf, params)
        output = output_ref(att_out, input_seq, params)

    return output.reshape(-1, output.shape[-1])                      # (B*L, user_num)


# ----------------------------- params & main ---------------------------------
def xavier(key, shape):
    fan_in, fan_out = shape[-2], shape[-1]
    std = math.sqrt(2.0 / (fan_in + fan_out))
    return (std * jax.random.normal(key, shape)).astype(jnp.float32)


def make_params(key):
    ks = jax.random.split(key, 16)
    dm_full = D_MODEL + POS_DIM
    p = {
        'pos_emb': xavier(ks[0], (CAS_NUM, POS_DIM)),
        'time_emb': xavier(ks[1], (TIME_STEPS, D_MODEL)),
        'dyn_emb': {k: xavier(jax.random.fold_in(ks[2], k), (USER_NUM, D_MODEL))
                    for k in DYN_KEYS},
        'wq': xavier(ks[3], (dm_full, N_HEADS * D_K)),
        'wk': xavier(ks[4], (dm_full, N_HEADS * D_K)),
        'wv': xavier(ks[5], (dm_full, N_HEADS * D_V)),
        'wo': xavier(ks[6], (N_HEADS * D_V, dm_full)),
        'w1': xavier(ks[7], (dm_full, dm_full)),
        'b1': jnp.zeros((1, dm_full), jnp.float32),
        'w2': xavier(ks[8], (dm_full, dm_full)),
        'b2': jnp.zeros((1, dm_full), jnp.float32),
        'g1': jnp.ones((1, dm_full), jnp.float32),
        'be1': jnp.zeros((1, dm_full), jnp.float32),
        'g2': jnp.ones((1, dm_full), jnp.float32),
        'be2': jnp.zeros((1, dm_full), jnp.float32),
        'w_lin': xavier(ks[9], (dm_full, USER_NUM)),     # stored as linear.weight.T
        'b_lin': jnp.zeros((1, USER_NUM), jnp.float32),
    }
    return p


if __name__ == "__main__":
    key = jax.random.PRNGKey(0)
    k_param, k_seq, k_ts = jax.random.split(key, 3)
    params = make_params(k_param)

    # input_seq: (B, L+1) user ids, PAD=0 tail
    input_seq = jax.random.randint(k_seq, (BATCH, SEQ_FULL), 1, USER_NUM, dtype=jnp.int32)
    input_seq = input_seq.at[0, 13:].set(PAD)
    input_seq = input_seq.at[1, 10:].set(PAD)

    # input_timestamp: (B, L+1) increasing timestamps in [1, 85)
    input_timestamp = jnp.sort(
        jax.random.randint(k_ts, (BATCH, SEQ_FULL), 1, 85, dtype=jnp.int32), axis=1)

    out = dyhgcn_forward(params, input_seq, input_timestamp, use_pallas=True)
    out = jax.block_until_ready(out)

    ref = dyhgcn_forward(params, input_seq, input_timestamp, use_pallas=False)
    ref = jax.block_until_ready(ref)

    assert out.shape == (BATCH * MAX_LEN, USER_NUM), out.shape
    assert bool(jnp.all(jnp.isfinite(out)))
    max_diff = float(jnp.max(jnp.abs(out - ref)))
    # bf16 MXU operands (f32 accumulate) + approx reciprocals vs. the all-f32
    # reference; unmasked logits have O(1) scale so 1e-1 absolute is a safe bound.
    assert max_diff < 1e-1, f"mismatch vs reference: {max_diff}"

    print("KERNEL_OK")
</pallas_src>

<mosaic_0001>
module attributes {stable_mosaic.version = 11 : i64} {
  func.func @dyhgcn_fused_kernel(%arg0: i32, %arg1: memref<1x16x32xf32, #tpu.memory_space<vmem>>, %arg2: memref<1x16x8x32xf32, #tpu.memory_space<vmem>>, %arg3: memref<1x1x128xf32, #tpu.memory_space<vmem>>, %arg4: memref<1x16x128xf32, #tpu.memory_space<vmem>>, %arg5: memref<16x8xf32, #tpu.memory_space<vmem>>, %arg6: memref<128x128xbf16, #tpu.memory_space<vmem>>, %arg7: memref<40x384xbf16, #tpu.memory_space<vmem>>, %arg8: memref<128x40xbf16, #tpu.memory_space<vmem>>, %arg9: memref<2x40x40xbf16, #tpu.memory_space<vmem>>, %arg10: memref<40x128xbf16, #tpu.memory_space<vmem>>, %arg11: memref<6x40xf32, #tpu.memory_space<vmem>>, %arg12: memref<1x16x128xf32, #tpu.memory_space<vmem>>) attributes {dimension_semantics = [#tpu.dimension_semantics<parallel>], iteration_bounds = array<i64: 2>, scalar_prefetch = 0 : i64, scratch_operands = 0 : i64, tpu.core_type = #tpu.core_type<tc>, window_params = [{transform_indices = @transform_0, window_bounds = array<i64: 1, 16, 32>}, {transform_indices = @transform_1, window_bounds = array<i64: 1, 16, 8, 32>}, {transform_indices = @transform_2, window_bounds = array<i64: 1, 1, 128>}, {transform_indices = @transform_3, window_bounds = array<i64: 1, 16, 128>}, {pipeline_mode = #tpu.pipeline_mode<synchronous>, transform_indices = @transform_4, window_bounds = array<i64: 16, 8>}, {pipeline_mode = #tpu.pipeline_mode<synchronous>, transform_indices = @transform_5, window_bounds = array<i64: 128, 128>}, {pipeline_mode = #tpu.pipeline_mode<synchronous>, transform_indices = @transform_6, window_bounds = array<i64: 40, 384>}, {pipeline_mode = #tpu.pipeline_mode<synchronous>, transform_indices = @transform_7, window_bounds = array<i64: 128, 40>}, {pipeline_mode = #tpu.pipeline_mode<synchronous>, transform_indices = @transform_8, window_bounds = array<i64: 2, 40, 40>}, {pipeline_mode = #tpu.pipeline_mode<synchronous>, transform_indices = @transform_9, window_bounds = array<i64: 40, 128>}, {pipeline_mode = #tpu.pipeline_mode<synchronous>, transform_indices = @transform_10, window_bounds = array<i64: 6, 40>}, {transform_indices = @transform_11, window_bounds = array<i64: 1, 16, 128>}]} {
    %c0 = arith.constant 0 : index
    %c0_0 = arith.constant 0 : index
    %c0_1 = arith.constant 0 : index
    %0 = vector.load %arg1[%c0, %c0_0, %c0_1] : memref<1x16x32xf32, #tpu.memory_space<vmem>>, vector<1x16x32xf32>
    %1 = vector.shape_cast %0 : vector<1x16x32xf32> to vector<16x32xf32>
    %c0_2 = arith.constant 0 : index
    %c0_3 = arith.constant 0 : index
    %c0_4 = arith.constant 0 : index
    %c0_5 = arith.constant 0 : index
    %2 = vector.load %arg2[%c0_2, %c0_3, %c0_4, %c0_5] : memref<1x16x8x32xf32, #tpu.memory_space<vmem>>, vector<1x16x8x32xf32>
    %3 = vector.shape_cast %2 : vector<1x16x8x32xf32> to vector<16x8x32xf32>
    %4 = vector.shape_cast %1 : vector<16x32xf32> to vector<16x1x32xf32>
    %5 = vector.broadcast %4 : vector<16x1x32xf32> to vector<16x8x32xf32>
    %6 = arith.mulf %5, %3 : vector<16x8x32xf32>
    %cst = arith.constant dense<0.000000e+00> : vector<16x8xf32>
    %7 = vector.multi_reduction <add>, %6, %cst [2] : vector<16x8x32xf32> to vector<16x8xf32>
    %cst_6 = arith.constant 0.176776692 : f32
    %8 = vector.broadcast %cst_6 : f32 to vector<16x8xf32>
    %9 = arith.mulf %7, %8 : vector<16x8xf32>
    %cst_7 = arith.constant dense<0xFF800000> : vector<16xf32>
    %10 = vector.multi_reduction <maximumf>, %9, %cst_7 [1] : vector<16x8xf32> to vector<16xf32>
    %11 = vector.shape_cast %10 : vector<16xf32> to vector<16x1xf32>
    %12 = vector.broadcast %11 : vector<16x1xf32> to vector<16x8xf32>
    %13 = arith.subf %9, %12 : vector<16x8xf32>
    %14 = math.exp %13 : vector<16x8xf32>
    %cst_8 = arith.constant dense<0.000000e+00> : vector<16xf32>
    %15 = vector.multi_reduction <add>, %14, %cst_8 [1] : vector<16x8xf32> to vector<16xf32>
    %16 = vector.shape_cast %15 : vector<16xf32> to vector<16x1xf32>
    %17 = tpu.reciprocal %16 {approx = true} : vector<16x1xf32> -> vector<16x1xf32>
    %18 = vector.broadcast %17 : vector<16x1xf32> to vector<16x8xf32>
    %19 = arith.mulf %14, %18 : vector<16x8xf32>
    %20 = vector.shape_cast %19 : vector<16x8xf32> to vector<16x8x1xf32>
    %21 = vector.broadcast %20 : vector<16x8x1xf32> to vector<16x8x32xf32>
    %22 = arith.mulf %21, %3 : vector<16x8x32xf32>
    %cst_9 = arith.constant dense<0.000000e+00> : vector<16x32xf32>
    %23 = vector.multi_reduction <add>, %22, %cst_9 [1] : vector<16x8x32xf32> to vector<16x32xf32>
    %c0_10 = arith.constant 0 : index
    %c0_11 = arith.constant 0 : index
    %24 = vector.load %arg5[%c0_10, %c0_11] : memref<16x8xf32, #tpu.memory_space<vmem>>, vector<16x8xf32>
    %25 = tpu.concatenate %23, %24 in 1 : vector<16x32xf32>, vector<16x8xf32> -> vector<16x40xf32>
    %26 = arith.truncf %25 : vector<16x40xf32> to vector<16x40xbf16>
    %c0_12 = arith.constant 0 : index
    %c0_13 = arith.constant 0 : index
    %27 = vector.load %arg6[%c0_12, %c0_13] : memref<128x128xbf16, #tpu.memory_space<vmem>>, vector<128x128xbf16>
    %c0_14 = arith.constant 0 : index
    %c0_15 = arith.constant 0 : index
    %28 = vector.load %arg7[%c0_14, %c0_15] : memref<40x384xbf16, #tpu.memory_space<vmem>>, vector<40x384xbf16>
    %cst_16 = arith.constant dense<0.000000e+00> : vector<16x384xf32>
    %29 = tpu.matmul %26, %28, %cst_16 {dimension_numbers = #tpu.dot_dimension_numbers<[1], [0], [0], [1], [0, 0, 1, 1], [], []>} : vector<16x40xbf16>, vector<40x384xbf16>, vector<16x384xf32> -> vector<16x384xf32>
    %30 = vector.extract_strided_slice %29 {offsets = [0, 0], sizes = [16, 128], strides = [1, 1]} : vector<16x384xf32> to vector<16x128xf32>
    %31 = arith.truncf %30 : vector<16x128xf32> to vector<16x128xbf16>
    %32 = vector.extract_strided_slice %29 {offsets = [0, 128], sizes = [16, 128], strides = [1, 1]} : vector<16x384xf32> to vector<16x128xf32>
    %33 = arith.truncf %32 : vector<16x128xf32> to vector<16x128xbf16>
    %34 = vector.extract_strided_slice %29 {offsets = [0, 256], sizes = [16, 128], strides = [1, 1]} : vector<16x384xf32> to vector<16x128xf32>
    %35 = arith.truncf %34 : vector<16x128xf32> to vector<16x128xbf16>
    %36 = tpu.concatenate %33, %33, %33, %33, %33, %33, %33, %33 in 0 : vector<16x128xbf16>, vector<16x128xbf16>, vector<16x128xbf16>, vector<16x128xbf16>, vector<16x128xbf16>, vector<16x128xbf16>, vector<16x128xbf16>, vector<16x128xbf16> -> vector<128x128xbf16>
    %37 = arith.mulf %36, %27 : vector<128x128xbf16>
    %38 = tpu.concatenate %35, %35, %35, %35, %35, %35, %35, %35 in 0 : vector<16x128xbf16>, vector<16x128xbf16>, vector<16x128xbf16>, vector<16x128xbf16>, vector<16x128xbf16>, vector<16x128xbf16>, vector<16x128xbf16>, vector<16x128xbf16> -> vector<128x128xbf16>
    %39 = arith.mulf %38, %27 : vector<128x128xbf16>
    %cst_17 = arith.constant dense<0.000000e+00> : vector<16x128xf32>
    %40 = tpu.matmul %31, %37, %cst_17 {dimension_numbers = #tpu.dot_dimension_numbers<[1], [1], [0], [0], [0, 0, 1, 0], [], []>} : vector<16x128xbf16>, vector<128x128xbf16>, vector<16x128xf32> -> vector<16x128xf32>
    %cst_18 = arith.constant 2.500000e-01 : f32
    %41 = vector.broadcast %cst_18 : f32 to vector<16x128xf32>
    %42 = arith.mulf %40, %41 : vector<16x128xf32>
    %c0_19 = arith.constant 0 : index
    %c0_20 = arith.constant 0 : index
    %c0_21 = arith.constant 0 : index
    %43 = vector.load %arg3[%c0_19, %c0_20, %c0_21] : memref<1x1x128xf32, #tpu.memory_space<vmem>>, vector<1x1x128xf32>
    %44 = vector.shape_cast %43 : vector<1x1x128xf32> to vector<1x128xf32>
    %45 = vector.broadcast %44 : vector<1x128xf32> to vector<16x128xf32>
    %46 = arith.addf %42, %45 : vector<16x128xf32>
    %cst_22 = arith.constant dense<0xFF800000> : vector<16xf32>
    %47 = vector.multi_reduction <maximumf>, %46, %cst_22 [1] : vector<16x128xf32> to vector<16xf32>
    %48 = vector.shape_cast %47 : vector<16xf32> to vector<16x1xf32>
    %49 = vector.broadcast %48 : vector<16x1xf32> to vector<16x128xf32>
    %50 = arith.subf %46, %49 : vector<16x128xf32>
    %51 = math.exp %50 : vector<16x128xf32>
    %52 = arith.truncf %51 : vector<16x128xf32> to vector<16x128xbf16>
    %cst_23 = arith.constant dense<0.000000e+00> : vector<16x128xf32>
    %53 = tpu.matmul %52, %27, %cst_23 {dimension_numbers = #tpu.dot_dimension_numbers<[1], [0], [0], [1], [0, 0, 1, 1], [], []>} : vector<16x128xbf16>, vector<128x128xbf16>, vector<16x128xf32> -> vector<16x128xf32>
    %54 = tpu.reciprocal %53 {approx = true} : vector<16x128xf32> -> vector<16x128xf32>
    %55 = arith.mulf %51, %54 : vector<16x128xf32>
    %56 = arith.truncf %55 : vector<16x128xf32> to vector<16x128xbf16>
    %cst_24 = arith.constant dense<0.000000e+00> : vector<16x128xf32>
    %57 = tpu.matmul %56, %39, %cst_24 {dimension_numbers = #tpu.dot_dimension_numbers<[1], [0], [0], [1], [0, 0, 1, 1], [], []>} : vector<16x128xbf16>, vector<128x128xbf16>, vector<16x128xf32> -> vector<16x128xf32>
    %58 = arith.truncf %57 : vector<16x128xf32> to vector<16x128xbf16>
    %c0_25 = arith.constant 0 : index
    %c0_26 = arith.constant 0 : index
    %59 = vector.load %arg8[%c0_25, %c0_26] : memref<128x40xbf16, #tpu.memory_space<vmem>>, vector<128x40xbf16>
    %cst_27 = arith.constant dense<0.000000e+00> : vector<16x40xf32>
    %60 = tpu.matmul %58, %59, %cst_27 {dimension_numbers = #tpu.dot_dimension_numbers<[1], [0], [0], [1], [0, 0, 1, 1], [], []>} : vector<16x128xbf16>, vector<128x40xbf16>, vector<16x40xf32> -> vector<16x40xf32>
    %c0_28 = arith.constant 0 : index
    %c0_29 = arith.constant 0 : index
    %61 = vector.load %arg11[%c0_28, %c0_29] : memref<6x40xf32, #tpu.memory_space<vmem>>, vector<6x40xf32>
    %62 = vector.extract_strided_slice %61 {offsets = [0, 0], sizes = [1, 40], strides = [1, 1]} : vector<6x40xf32> to vector<1x40xf32>
    %63 = vector.extract_strided_slice %61 {offsets = [1, 0], sizes = [1, 40], strides = [1, 1]} : vector<6x40xf32> to vector<1x40xf32>
    %64 = vector.extract_strided_slice %61 {offsets = [2, 0], sizes = [1, 40], strides = [1, 1]} : vector<6x40xf32> to vector<1x40xf32>
    %65 = vector.extract_strided_slice %61 {offsets = [3, 0], sizes = [1, 40], strides = [1, 1]} : vector<6x40xf32> to vector<1x40xf32>
    %66 = vector.extract_strided_slice %61 {offsets = [4, 0], sizes = [1, 40], strides = [1, 1]} : vector<6x40xf32> to vector<1x40xf32>
    %67 = vector.extract_strided_slice %61 {offsets = [5, 0], sizes = [1, 40], strides = [1, 1]} : vector<6x40xf32> to vector<1x40xf32>
    %68 = arith.addf %25, %60 : vector<16x40xf32>
    %cst_30 = arith.constant dense<0.000000e+00> : vector<16xf32>
    %69 = vector.multi_reduction <add>, %68, %cst_30 [1] : vector<16x40xf32> to vector<16xf32>
    %70 = vector.shape_cast %69 : vector<16xf32> to vector<16x1xf32>
    %cst_31 = arith.constant 4.000000e+01 : f32
    %71 = vector.broadcast %cst_31 : f32 to vector<16x1xf32>
    %72 = arith.divf %70, %71 : vector<16x1xf32>
    %73 = vector.broadcast %72 : vector<16x1xf32> to vector<16x40xf32>
    %74 = arith.subf %68, %73 : vector<16x40xf32>
    %75 = arith.mulf %74, %74 : vector<16x40xf32>
    %cst_32 = arith.constant dense<0.000000e+00> : vector<16xf32>
    %76 = vector.multi_reduction <add>, %75, %cst_32 [1] : vector<16x40xf32> to vector<16xf32>
    %77 = vector.shape_cast %76 : vector<16xf32> to vector<16x1xf32>
    %cst_33 = arith.constant 4.000000e+01 : f32
    %78 = vector.broadcast %cst_33 : f32 to vector<16x1xf32>
    %79 = arith.divf %77, %78 : vector<16x1xf32>
    %80 = vector.broadcast %72 : vector<16x1xf32> to vector<16x40xf32>
    %81 = arith.subf %68, %80 : vector<16x40xf32>
    %cst_34 = arith.constant 9.99999974E-6 : f32
    %82 = vector.broadcast %cst_34 : f32 to vector<16x1xf32>
    %83 = arith.addf %79, %82 : vector<16x1xf32>
    %84 = math.rsqrt %83 : vector<16x1xf32>
    %85 = vector.broadcast %84 : vector<16x1xf32> to vector<16x40xf32>
    %86 = arith.mulf %81, %85 : vector<16x40xf32>
    %87 = vector.broadcast %62 : vector<1x40xf32> to vector<16x40xf32>
    %88 = arith.mulf %86, %87 : vector<16x40xf32>
    %89 = vector.broadcast %63 : vector<1x40xf32> to vector<16x40xf32>
    %90 = arith.addf %88, %89 : vector<16x40xf32>
    %91 = arith.truncf %90 : vector<16x40xf32> to vector<16x40xbf16>
    %c0_35 = arith.constant 0 : index
    %c0_36 = arith.constant 0 : index
    %c0_37 = arith.constant 0 : index
    %92 = vector.load %arg9[%c0_35, %c0_36, %c0_37] : memref<2x40x40xbf16, #tpu.memory_space<vmem>>, vector<1x40x40xbf16>
    %93 = vector.shape_cast %92 : vector<1x40x40xbf16> to vector<40x40xbf16>
    %cst_38 = arith.constant dense<0.000000e+00> : vector<16x40xf32>
    %94 = tpu.matmul %91, %93, %cst_38 {dimension_numbers = #tpu.dot_dimension_numbers<[1], [0], [0], [1], [0, 0, 1, 1], [], []>} : vector<16x40xbf16>, vector<40x40xbf16>, vector<16x40xf32> -> vector<16x40xf32>
    %95 = vector.broadcast %66 : vector<1x40xf32> to vector<16x40xf32>
    %96 = arith.addf %94, %95 : vector<16x40xf32>
    %cst_39 = arith.constant 0.000000e+00 : f32
    %97 = vector.broadcast %cst_39 : f32 to vector<16x40xf32>
    %98 = arith.maximumf %96, %97 : vector<16x40xf32>
    %99 = arith.truncf %98 : vector<16x40xf32> to vector<16x40xbf16>
    %c1 = arith.constant 1 : index
    %c0_40 = arith.constant 0 : index
    %c0_41 = arith.constant 0 : index
    %100 = vector.load %arg9[%c1, %c0_40, %c0_41] : memref<2x40x40xbf16, #tpu.memory_space<vmem>>, vector<1x40x40xbf16>
    %101 = vector.shape_cast %100 : vector<1x40x40xbf16> to vector<40x40xbf16>
    %cst_42 = arith.constant dense<0.000000e+00> : vector<16x40xf32>
    %102 = tpu.matmul %99, %101, %cst_42 {dimension_numbers = #tpu.dot_dimension_numbers<[1], [0], [0], [1], [0, 0, 1, 1], [], []>} : vector<16x40xbf16>, vector<40x40xbf16>, vector<16x40xf32> -> vector<16x40xf32>
    %103 = vector.broadcast %67 : vector<1x40xf32> to vector<16x40xf32>
    %104 = arith.addf %102, %103 : vector<16x40xf32>
    %105 = arith.addf %104, %90 : vector<16x40xf32>
    %cst_43 = arith.constant dense<0.000000e+00> : vector<16xf32>
    %106 = vector.multi_reduction <add>, %105, %cst_43 [1] : vector<16x40xf32> to vector<16xf32>
    %107 = vector.shape_cast %106 : vector<16xf32> to vector<16x1xf32>
    %cst_44 = arith.constant 4.000000e+01 : f32
    %108 = vector.broadcast %cst_44 : f32 to vector<16x1xf32>
    %109 = arith.divf %107, %108 : vector<16x1xf32>
    %110 = vector.broadcast %109 : vector<16x1xf32> to vector<16x40xf32>
    %111 = arith.subf %105, %110 : vector<16x40xf32>
    %112 = arith.mulf %111, %111 : vector<16x40xf32>
    %cst_45 = arith.constant dense<0.000000e+00> : vector<16xf32>
    %113 = vector.multi_reduction <add>, %112, %cst_45 [1] : vector<16x40xf32> to vector<16xf32>
    %114 = vector.shape_cast %113 : vector<16xf32> to vector<16x1xf32>
    %cst_46 = arith.constant 4.000000e+01 : f32
    %115 = vector.broadcast %cst_46 : f32 to vector<16x1xf32>
    %116 = arith.divf %114, %115 : vector<16x1xf32>
    %117 = vector.broadcast %109 : vector<16x1xf32> to vector<16x40xf32>
    %118 = arith.subf %105, %117 : vector<16x40xf32>
    %cst_47 = arith.constant 9.99999974E-6 : f32
    %119 = vector.broadcast %cst_47 : f32 to vector<16x1xf32>
    %120 = arith.addf %116, %119 : vector<16x1xf32>
    %121 = math.rsqrt %120 : vector<16x1xf32>
    %122 = vector.broadcast %121 : vector<16x1xf32> to vector<16x40xf32>
    %123 = arith.mulf %118, %122 : vector<16x40xf32>
    %124 = vector.broadcast %64 : vector<1x40xf32> to vector<16x40xf32>
    %125 = arith.mulf %123, %124 : vector<16x40xf32>
    %126 = vector.broadcast %65 : vector<1x40xf32> to vector<16x40xf32>
    %127 = arith.addf %125, %126 : vector<16x40xf32>
    %128 = arith.truncf %127 : vector<16x40xf32> to vector<16x40xbf16>
    %c0_48 = arith.constant 0 : index
    %c0_49 = arith.constant 0 : index
    %129 = vector.load %arg10[%c0_48, %c0_49] : memref<40x128xbf16, #tpu.memory_space<vmem>>, vector<40x128xbf16>
    %cst_50 = arith.constant dense<0.000000e+00> : vector<16x128xf32>
    %130 = tpu.matmul %128, %129, %cst_50 {dimension_numbers = #tpu.dot_dimension_numbers<[1], [0], [0], [1], [0, 0, 1, 1], [], []>} : vector<16x40xbf16>, vector<40x128xbf16>, vector<16x128xf32> -> vector<16x128xf32>
    %c0_51 = arith.constant 0 : index
    %c0_52 = arith.constant 0 : index
    %c0_53 = arith.constant 0 : index
    %131 = vector.load %arg4[%c0_51, %c0_52, %c0_53] : memref<1x16x128xf32, #tpu.memory_space<vmem>>, vector<1x16x128xf32>
    %132 = vector.shape_cast %131 : vector<1x16x128xf32> to vector<16x128xf32>
    %133 = arith.addf %130, %132 : vector<16x128xf32>
    %c0_54 = arith.constant 0 : index
    %c0_55 = arith.constant 0 : index
    %c0_56 = arith.constant 0 : index
    %134 = vector.load %arg12[%c0_54, %c0_55, %c0_56] : memref<1x16x128xf32, #tpu.memory_space<vmem>>, vector<1x16x128xf32>
    %135 = vector.shape_cast %134 : vector<1x16x128xf32> to vector<16x128xf32>
    %136 = vector.shape_cast %133 : vector<16x128xf32> to vector<1x16x128xf32>
    tpu.vector_store %arg12[%c0_54, %c0_55, %c0_56], %136 {strides = array<i32>} : memref<1x16x128xf32, #tpu.memory_space<vmem>>, vector<1x16x128xf32>,
    return
  }
  func.func @transform_0(%arg0: i32) -> (i32, i32, i32) {
    %c0_i32 = arith.constant 0 : i32
    %c0_i32_0 = arith.constant 0 : i32
    %c0_i32_1 = arith.constant 0 : i32
    return %arg0, %c0_i32, %c0_i32_0 : i32, i32, i32
  }
  func.func @transform_1(%arg0: i32) -> (i32, i32, i32, i32) {
    %c0_i32 = arith.constant 0 : i32
    %c0_i32_0 = arith.constant 0 : i32
    %c0_i32_1 = arith.constant 0 : i32
    %c0_i32_2 = arith.constant 0 : i32
    return %arg0, %c0_i32, %c0_i32_0, %c0_i32_1 : i32, i32, i32, i32
  }
  func.func @transform_2(%arg0: i32) -> (i32, i32, i32) {
    %c0_i32 = arith.constant 0 : i32
    %c0_i32_0 = arith.constant 0 : i32
    %c0_i32_1 = arith.constant 0 : i32
    return %arg0, %c0_i32, %c0_i32_0 : i32, i32, i32
  }
  func.func @transform_3(%arg0: i32) -> (i32, i32, i32) {
    %c0_i32 = arith.constant 0 : i32
    %c0_i32_0 = arith.constant 0 : i32
    %c0_i32_1 = arith.constant 0 : i32
    return %arg0, %c0_i32, %c0_i32_0 : i32, i32, i32
  }
  func.func @transform_4(%arg0: i32) -> (i32, i32) {
    %c0_i32 = arith.constant 0 : i32
    %c0_i32_0 = arith.constant 0 : i32
    %c0_i32_1 = arith.constant 0 : i32
    return %c0_i32, %c0_i32_0 : i32, i32
  }
  func.func @transform_5(%arg0: i32) -> (i32, i32) {
    %c0_i32 = arith.constant 0 : i32
    %c0_i32_0 = arith.constant 0 : i32
    %c0_i32_1 = arith.constant 0 : i32
    return %c0_i32, %c0_i32_0 : i32, i32
  }
  func.func @transform_6(%arg0: i32) -> (i32, i32) {
    %c0_i32 = arith.constant 0 : i32
    %c0_i32_0 = arith.constant 0 : i32
    %c0_i32_1 = arith.constant 0 : i32
    return %c0_i32, %c0_i32_0 : i32, i32
  }
  func.func @transform_7(%arg0: i32) -> (i32, i32) {
    %c0_i32 = arith.constant 0 : i32
    %c0_i32_0 = arith.constant 0 : i32
    %c0_i32_1 = arith.constant 0 : i32
    return %c0_i32, %c0_i32_0 : i32, i32
  }
  func.func @transform_8(%arg0: i32) -> (i32, i32, i32) {
    %c0_i32 = arith.constant 0 : i32
    %c0_i32_0 = arith.constant 0 : i32
    %c0_i32_1 = arith.constant 0 : i32
    %c0_i32_2 = arith.constant 0 : i32
    return %c0_i32, %c0_i32_0, %c0_i32_1 : i32, i32, i32
  }
  func.func @transform_9(%arg0: i32) -> (i32, i32) {
    %c0_i32 = arith.constant 0 : i32
    %c0_i32_0 = arith.constant 0 : i32
    %c0_i32_1 = arith.constant 0 : i32
    return %c0_i32, %c0_i32_0 : i32, i32
  }
  func.func @transform_10(%arg0: i32) -> (i32, i32) {
    %c0_i32 = arith.constant 0 : i32
    %c0_i32_0 = arith.constant 0 : i32
    %c0_i32_1 = arith.constant 0 : i32
    return %c0_i32, %c0_i32_0 : i32, i32
  }
  func.func @transform_11(%arg0: i32) -> (i32, i32, i32) {
    %c0_i32 = arith.constant 0 : i32
    %c0_i32_0 = arith.constant 0 : i32
    %c0_i32_1 = arith.constant 0 : i32
    return %arg0, %c0_i32, %c0_i32_0 : i32, i32, i32
  }
}

</mosaic_0001>

<bundles_post_ra>
// kernel: custom-call.18
= control target key start
LH: loop header
LB: loop body
LE: loop exit
PB: predicated region body
PF: predicated region fallthrough
CT: control target
= control target key end

     0   :  { %s6_s0 = inlined_call_operand.vmem [shape: s32[4], index: 0, kind: output, shape index: {}]  }

// kernel: dyhgcn_forward.1
= control target key start
LH: loop header
LB: loop body
LE: loop exit
PB: predicated region body
PF: predicated region fallthrough
CT: control target
= control target key end

     0   :  { %s3006_s0 = inlined_call_operand.vmem [shape: f32[2,16,32], index: 0, kind: input, shape index: {}]   ;;  %s3007_s1 = inlined_call_operand.vmem [shape: f32[2,16,8,32], index: 1, kind: input, shape index: {}]   ;;  %s3008_s2 = inlined_call_operand.vmem [shape: f32[2,1,128], index: 2, kind: input, shape index: {}]   ;;  %s3009_s3 = inlined_call_operand.vmem [shape: f32[2,16,128], index: 3, kind: input, shape index: {}]   ;;  %s3010_s4 = inlined_call_operand.vmem [shape: f32[16,8], index: 4, kind: input, shape index: {}]   ;;  %s3011_s5 = inlined_call_operand.vmem [shape: bf16[128,128], index: 5, kind: input, shape index: {}]   ;;  %s3012_s6 = inlined_call_operand.vmem [shape: bf16[40,384], index: 6, kind: input, shape index: {}]   ;;  %s3013_s7 = inlined_call_operand.vmem [shape: bf16[128,40], index: 7, kind: input, shape index: {}]   ;;  %s3014_s8 = inlined_call_operand.vmem [shape: bf16[2,40,40], index: 8, kind: input, shape index: {}]   ;;  %s3015_s9 = inlined_call_operand.vmem [shape: bf16[40,128], index: 9, kind: input, shape index: {}]   ;;  %s3016_s10 = inlined_call_operand.vmem [shape: f32[6,40], index: 10, kind: input, shape index: {}]   ;;  %s3017_s11 = inlined_call_operand.hbm [shape: f32[2,16,128], index: 11, kind: output, shape index: {}]  }
   0x1   :  { %3019 = sst [smem:[#allocation5_spill]] %s3006_s0 }
   0x2   :  { %3020 = sst [smem:[#allocation6_spill]] %s3007_s1 }
   0x3   :  { %3021 = sst [smem:[#allocation7_spill]] %s3008_s2 }
   0x4   :  { %3022 = sst [smem:[#allocation8_spill]] %s3010_s4 }
   0x5   :  { %16 = vsyncpa [#allocation3], 0 }
   0x6   :  { %18 = vsyncpa [#allocation3 + $0x1], 0  ;;  %s2297_s17 = smov 0   ;;  %s2299_s18 = smov 0  }
   0x7   :  { %s2301_s19 = smov 0   ;;  %s2303_s20 = smov 0  }
   0x8 LB: > { %s2318_s21 = sadd.s32 4294967295, %s2230_s20   ;;  %s1895_s22 = sadd.s32 4294967294, %s2230_s20   ;;  %s2230_s20 = sphi %s2303_s20, %s3033_s20   ;;  %s2226_s19 = sphi %s2301_s19, %s3032_s19   ;;  %s2222_s18 = sphi %s2299_s18, %s3031_s18   ;;  %s2218_s17 = sphi %s2297_s17, %s3030_s17  }
   0x9   : > { %s2322_s23 = sadd.s32 1, %s2230_s20   ;;  %s282_s24 = sadd.s32 1, %s2226_s19 }
   0xa   : > { %s279_s25 = ssub.s32 %s2230_s20, %s2322_s23  ;;  %p292_p0 = scmp.ne.s32.totalorder %s2226_s19, %s2222_s18 }
   0xb   : > { %p280_p1 = scmp.eq.s32.totalorder %s279_s25, 0  ;;  %p293_p2 = scmp.eq.s32.totalorder %s2318_s21, 1 }
   0xc   : > { %p298_p3 = scmp.ne.s32.totalorder %s2222_s18, %s2218_s17  ;;  %p299_p4 = scmp.eq.s32.totalorder %s1895_s22, 1 }
   0xd   : > { %s2333_s26 = scalar_select %p280_p1, %s2226_s19, %s282_s24  }
   0xe   : > { %p2335_p5 = por %p293_p2, %p292_p0  ;;  %p2339_p6 = por %p299_p4, %p298_p3 }
   0xf   : > { %p1898_p7 = scmp.ge.s32.totalorder %s2230_s20, 1  ;;  %p368_p8 = scmp.lt.s32.totalorder %s2230_s20, 3 }
  0x11   : > { %p369_p9 = pnand %p1898_p7, %p368_p8 }
  0x12   : > { %p421_p10 = scmp.lt.s32.totalorder (!%p369_p9), %s2318_s21, 1  ;;  %s3025_s0 = sld [smem:[#allocation5_spill]] (!%p369_p9) }
  0x13   : > { %372 = sbr.rel (%p369_p9) target bundleno = 2674 (0xa72), region = 64  ;;  %s3026_s1 = sld [smem:[#allocation6_spill]] (!%p369_p9) }
  0x14   : > { %s3027_s4 = sld [smem:[#allocation8_spill]] (!%p369_p9)  ;;  %s2233_s13 = smov (!%p369_p9), 32  }
  0x15   : > { %s3028_s2 = sld [smem:[#allocation7_spill]] (!%p369_p9) }
  0x18   : > { %s2347_s29 = scalar_select %p421_p10, %s2318_s21, 1  ;;  %vm522_vm0 = vcmask 261120   ;;  %vm621_vm1 = vcmask 1041409   ;;  %vm623_vm2 = vcmask 1042434   ;;  %vm625_vm3 = vcmask 1043459  }
  0x19   : > { %vm627_vm4 = vcmask 1044484   ;;  %vm629_vm5 = vcmask 1045509   ;;  %vm631_vm6 = vcmask 1046534   ;;  %vm633_vm7 = vcmask 1047559  }
  0x1a   : > { %s3018_s30 = sshll.u32 %s2347_s29, 4  ;;  %s2035_s12 = sshll.u32 %s2347_s29, 7  ;;  %vm644_vm8 = vcmask 64512   ;;  %vm1210_vm9 = vcmask 1043456   ;;  %vm1206_vm10 = vcmask 326656  }
  0x1b   : > { %s425_s15 = scalar_lea.vmem %s3025_s0, %s3018_s30  ;;  %s2359_s24 = scalar_lea.vmem %s3026_s1, %s2035_s12 }
  0x1c   : > { %v2361_v0 = vld [vmem:[%s425_s15 + $0x8] sm:$0xff]  ;;  %v2364_v1 = vld [vmem:[%s2359_s24 + $0x40] sm:$0xff]  ;;  %v2375_v7 = vld [vmem:[%s2359_s24 + $0x10] sm:$0xff]  ;;  %s433_s14 = scalar_lea.vmem %s3028_s2, %s2347_s29  ;;  %s418_s30 = sand.u32 1, %s2222_s18  }
  0x1d   : > { %v2366_v2 = vld [vmem:[%s425_s15] sm:$0xff]  ;;  %v482_v3 = vperm.slane %v2361_v0, 0  ;;  %v467_v8 = vrot.slane %v2361_v0, 1  ;;  %v468_v10 = vrot.slane %v2361_v0, 2  ;;  %v2383_v14 = vld [vmem:[%s2359_s24 + $0x48] sm:$0xff]  ;;  %v2392_v22 = vld [vmem:[%s2359_s24 + $0x50] sm:$0xff] }
  0x1e   : > { %v2370_v4 = vld [vmem:[%s2359_s24] sm:$0xff]  ;;  %v474_v5 = vperm.slane %v2366_v2, 0  ;;  %v461_v6 = vrot.slane %v2366_v2, 2  ;;  %v460_v9 = vrot.slane %v2366_v2, 1  ;;  %v2386_v16 = vld [vmem:[%s2359_s24 + $0x8] sm:$0xff]  ;;  %v469_v23 = vrot.slane %v2361_v0, 3 }
  0x1f   : > { %v514_v11 = vmul.f32 %v482_v3, %v2364_v1  ;;  %v483_v15 = vperm.slane %v467_v8, 0  ;;  %v484_v21 = vperm.slane %v468_v10, 0  ;;  %v462_v27 = vrot.slane %v2366_v2, 3  ;;  %v2404_v34 = vld [vmem:[%s2359_s24 + $0x58] sm:$0xff]  ;;  %v2411_v38 = vld [vmem:[%s2359_s24 + $0x20] sm:$0xff]  ;;  %v2422_v49 = vld [vmem:[%s2359_s24 + $0x28] sm:$0xff] }
  0x20   : > { %v506_v12 = vmul.f32 %v474_v5, %v2370_v4  ;;  %v476_v13 = vperm.slane %v461_v6, 0  ;;  %v475_v17 = vperm.slane %v460_v9, 0  ;;  %v463_v29 = vrot.slane %v2366_v2, 4  ;;  %v2407_v35 = vld [vmem:[%s2359_s24 + $0x18] sm:$0xff]  ;;  %v2425_v50 = vld [vmem:[%s2359_s24 + $0x60] sm:$0xff]  ;;  %v2429_v53 = vld [vmem:[%s2359_s24 + $0x68] sm:$0xff] }
  0x21   : > { %v547_v18 = vsel %vm522_vm0, %v514_v11, 0.0  ;;  %v515_v25 = vmul.f32 %v483_v15, %v2383_v14  ;;  %v516_v28 = vmul.f32 %v484_v21, %v2392_v22  ;;  %v485_v32 = vperm.slane %v469_v23, 0  ;;  %v2440_v3 = vld [vmem:[%s2359_s24 + $0x70] sm:$0xff]  ;;  %v2447_v9 = vld [vmem:[%s2359_s24 + $0x38] sm:$0xff]  ;;  %s3029_s16 = sshll.u32 %s2347_s29, 4  ;;  %s1899_s12 = sshll.u32 %s418_s30, 4 }
  0x22   : > { %v523_v19 = vsel %vm522_vm0, %v506_v12, 0.0  ;;  %v508_v20 = vmul.f32 %v476_v13, %v2375_v7  ;;  %548 = vadd.xlane.f32.xlu1 %v547_v18  ;;  %v507_v26 = vmul.f32 %v475_v17, %v2386_v16  ;;  %v477_v33 = vperm.slane %v462_v27, 0  ;;  %v2443_v5 = vld [vmem:[%s2359_s24 + $0x30] sm:$0xff]  ;;  %v2456_v18 = vld [vmem:[%s2359_s24 + $0x78] sm:$0xff]  ;;  %s438_s25 = scalar_lea.vmem %s3009_s3, %s3029_s16  ;;  %s420_s15 = scalar_lea.vmem [#allocation2], %s1899_s12 }
  0x23   : > { %524 = vadd.xlane.f32.xlu0 %v523_v19  ;;  %v550_v30 = vsel %vm522_vm0, %v515_v25, 0.0  ;;  %v553_v36 = vsel %vm522_vm0, %v516_v28, 0.0  ;;  %v478_v37 = vperm.slane %v463_v29, 0  ;;  %v517_v39 = vmul.f32 %v485_v32, %v2404_v34  ;;  %s1797_s2 = sshll.u32 %s420_s15, 4  ;;  %s1785_s29 = scalar_lea.sflag [#allocation3], %s418_s30  ;;  %s1798_s2 = int_to_ptr.vmem [resolvable:$true] %s1797_s2 }
  0x24   : > { %v529_v24 = vsel %vm522_vm0, %v508_v20, 0.0  ;;  %v526_v31 = vsel %vm522_vm0, %v507_v26, 0.0  ;;  %v509_v40 = vmul.f32 %v477_v33, %v2407_v35  ;;  %v464_v41 = vrot.slane %v2366_v2, 5  ;;  %s2188_s12 = scalar_lea.hbm %s3017_s11, 32 }
  0x25   : > { %530 = vadd.xlane.f32.xlu2 %v529_v24  ;;  %v470_v42 = vrot.slane %v2361_v0, 4  ;;  %v510_v43 = vmul.f32 %v478_v37, %v2411_v38  ;;  %v471_v44 = vrot.slane %v2361_v0, 5  ;;  %v556_v45 = vsel %vm522_vm0, %v517_v39, 0.0 }
  0x26   : > { %v532_v46 = vsel %vm522_vm0, %v509_v40, 0.0  ;;  %v479_v47 = vperm.slane %v464_v41, 0  ;;  %v472_v56 = vrot.slane %v2361_v0, 6  ;;  %v465_v57 = vrot.slane %v2366_v2, 6 }
  0x27   : > { %v486_v48 = vperm.slane %v470_v42, 0  ;;  %v535_v51 = vsel %vm522_vm0, %v510_v43, 0.0  ;;  %v487_v52 = vperm.slane %v471_v44, 0  ;;  %v466_v59 = vrot.slane %v2366_v2, 7 }
  0x28   : > { %v511_v54 = vmul.f32 %v479_v47, %v2422_v49  ;;  %v488_v62 = vperm.slane %v472_v56, 0  ;;  %v480_v63 = vperm.slane %v465_v57, 0  ;;  %v473_v11 = vrot.slane %v2361_v0, 7 }
  0x29   : > { %v518_v55 = vmul.f32 %v486_v48, %v2425_v50  ;;  %v519_v58 = vmul.f32 %v487_v52, %v2429_v53  ;;  %v481_v8 = vperm.slane %v466_v59, 0 }
  0x2a   : > { %551 = vadd.xlane.f32.xlu1 %v550_v30  ;;  %v538_v60 = vsel %vm522_vm0, %v511_v54, 0.0  ;;  %v520_v2 = vmul.f32 %v488_v62, %v2440_v3  ;;  %v512_v10 = vmul.f32 %v480_v63, %v2443_v5  ;;  %v489_v17 = vperm.slane %v473_v11, 0 }
  0x2b   : > { %527 = vadd.xlane.f32.xlu0 %v526_v31  ;;  %v559_v61 = vsel %vm522_vm0, %v518_v55, 0.0  ;;  %v562_v6 = vsel %vm522_vm0, %v519_v58, 0.0  ;;  %v513_v12 = vmul.f32 %v481_v8, %v2447_v9  ;;  %v603_v30 = vlaneseq }
  0x2c   : > { %v565_v13 = vsel %vm522_vm0, %v520_v2, 0.0  ;;  %v541_v15 = vsel %vm522_vm0, %v512_v10, 0.0  ;;  %v521_v20 = vmul.f32 %v489_v17, %v2456_v18 }
  0x2d   : > { %554 = vadd.xlane.f32.xlu2 %v553_v36  ;;  %v544_v19 = vsel %vm522_vm0, %v513_v12, 0.0  ;;  %v2463_v33 = vand.u32 127, %v603_v30 }
  0x2e   : > { %v568_v21 = vsel %vm522_vm0, %v521_v20, 0.0 }
  0x32   : > { %557 = vadd.xlane.f32.xlu1 %v556_v45 }
  0x33   : > { %533 = vadd.xlane.f32.xlu0 %v532_v46 }
  0x35   : > { %536 = vadd.xlane.f32.xlu2 %v535_v51 }
  0x3a   : > { %539 = vadd.xlane.f32.xlu1 %v538_v60 }
  0x3b   : > { %560 = vadd.xlane.f32.xlu0 %v559_v61 }
  0x3d   : > { %563 = vadd.xlane.f32.xlu2 %v562_v6 }
  0x42   : > { %566 = vadd.xlane.f32.xlu1 %v565_v13 }
  0x43   : > { %542 = vadd.xlane.f32.xlu0 %v541_v15 }
  0x45   : > { %545 = vadd.xlane.f32.xlu2 %v544_v19 }
  0x4b   : > { %569 = vadd.xlane.f32.xlu0 %v568_v21 }
  0x95   : > { %v549_v0 = vpop.xlane.xlu1 %548 }
  0x96   : > { %v525_v23 = vpop.xlane.xlu0 %524  ;;  %v2473_v43 = vmul.f32 0.17677669, %v549_v0 }
  0x97   : > { %v2465_v36 = vmul.f32 0.17677669, %v525_v23 }
  0x98   : > { %v531_v24 = vpop.xlane.xlu2 %530  ;;  %v613_v55 = vperm.slane %v2473_v43, %v2463_v33 }
  0x99   : > { %v2471_v42 = vmul.f32 0.17677669, %v531_v24  ;;  %v605_v44 = vperm.slane %v2465_v36, %v2463_v33 }
  0x9b   : > { %v607_v54 = vperm.slane %v2471_v42, %v2463_v33 }
  0x9d   : > { %v552_v25 = vpop.xlane.xlu1 %551 }
  0x9e   : > { %v528_v26 = vpop.xlane.xlu0 %527  ;;  %v2477_v45 = vmul.f32 0.17677669, %v552_v25 }
  0x9f   : > { %v2461_v32 = vmul.f32 0.17677669, %v528_v26 }
  0xa0   : > { %v555_v27 = vpop.xlane.xlu2 %554  ;;  %v614_v56 = vperm.slane %v2477_v45, %v2463_v33 }
  0xa1   : > { %v606_v37 = vperm.slane %v2461_v32, %v2463_v33  ;;  %v2492_v57 = vmul.f32 0.17677669, %v555_v27 }
  0xa2   : > { %v635_v10 = vsel %vm621_vm1, %v614_v56, %v613_v55  ;;  %v2232_v55 = vmov 0  }
  0xa3   : > { %v622_v48 = vsel %vm621_vm1, %v606_v37, %v605_v44  ;;  %v615_v11 = vperm.slane %v2492_v57, %v2463_v33  ;;  %2111 = vset.pattern.permute.xlu1 %v2232_v55  ;;  %2110 = vset.pattern.permute.xlu0 %v2232_v55 }
  0xa4   : > { %v624_v59 = vsel %vm623_vm2, %v607_v54, %v622_v48  ;;  %2112 = vset.pattern.permute.xlu2 %v2232_v55 }
  0xa5   : > { %v558_v28 = vpop.xlane.xlu1 %557  ;;  %v636_v26 = vsel %vm623_vm2, %v615_v11, %v635_v10 }
  0xa6   : > { %v534_v29 = vpop.xlane.xlu0 %533  ;;  %v582_v58 = vmul.f32 0.17677669, %v558_v28 }
  0xa7   : > { %v2469_v39 = vmul.f32 0.17677669, %v534_v29 }
  0xa8   : > { %v537_v31 = vpop.xlane.xlu2 %536  ;;  %v616_v12 = vperm.slane %v582_v58, %v2463_v33 }
  0xa9   : > { %v2479_v47 = vmul.f32 0.17677669, %v537_v31  ;;  %v608_v51 = vperm.slane %v2469_v39, %v2463_v33 }
  0xaa   : > { %v637_v27 = vsel %vm625_vm3, %v616_v12, %v636_v26 }
  0xab   : > { %v609_v60 = vperm.slane %v2479_v47, %v2463_v33  ;;  %v626_v61 = vsel %vm625_vm3, %v608_v51, %v624_v59 }
  0xad   : > { %v540_v40 = vpop.xlane.xlu1 %539  ;;  %v628_v15 = vsel %vm627_vm4, %v609_v60, %v626_v61 }
  0xae   : > { %v561_v41 = vpop.xlane.xlu0 %560  ;;  %v2484_v52 = vmul.f32 0.17677669, %v540_v40 }
  0xaf   : > { %v2500_v63 = vmul.f32 0.17677669, %v561_v41 }
  0xb0   : > { %v564_v46 = vpop.xlane.xlu2 %563  ;;  %v610_v62 = vperm.slane %v2484_v52, %v2463_v33 }
  0xb1   : > { %v2509_v17 = vmul.f32 0.17677669, %v564_v46  ;;  %v617_v21 = vperm.slane %v2500_v63, %v2463_v33 }
  0xb2   : > { %v630_v23 = vsel %vm629_vm5, %v610_v62, %v628_v15 }
  0xb3   : > { %v618_v28 = vperm.slane %v2509_v17, %v2463_v33  ;;  %v638_v30 = vsel %vm627_vm4, %v617_v21, %v637_v27 }
  0xb5   : > { %v567_v8 = vpop.xlane.xlu1 %566  ;;  %v639_v46 = vsel %vm629_vm5, %v618_v28, %v638_v30 }
  0xb6   : > { %v543_v6 = vpop.xlane.xlu0 %542  ;;  %v2517_v0 = vmul.f32 0.17677669, %v567_v8 }
  0xb7   : > { %v2502_v2 = vmul.f32 0.17677669, %v543_v6 }
  0xb8   : > { %v546_v13 = vpop.xlane.xlu2 %545  ;;  %v619_v31 = vperm.slane %v2517_v0, %v2463_v33 }
  0xb9   : > { %v611_v19 = vperm.slane %v2502_v2, %v2463_v33  ;;  %v2513_v20 = vmul.f32 0.17677669, %v546_v13 }
  0xba   : > { %v640_v48 = vsel %vm631_vm6, %v619_v31, %v639_v46 }
  0xbb   : > { %v612_v24 = vperm.slane %v2513_v20, %v2463_v33  ;;  %v632_v25 = vsel %vm631_vm6, %v611_v19, %v630_v23 }
  0xbd   : > { %v634_v29 = vsel %vm633_vm7, %v612_v24, %v632_v25 }
  0xbe   : > { %v570_v37 = vpop.xlane.xlu0 %569  ;;  %v645_v40 = vsel %vm644_vm8, %v634_v29, -inf }
  0xbf   : > { %v2532_v41 = vmul.f32 0.17677669, %v570_v37  ;;  %646 = vmax.xlane.f32.xlu1 %v645_v40 }
  0xc1   : > { %v620_v44 = vperm.slane %v2532_v41, %v2463_v33 }
  0xc3   : > { %v641_v51 = vsel %vm633_vm7, %v620_v44, %v640_v48 }
  0xc4   : > { %v648_v54 = vsel %vm644_vm8, %v641_v51, -inf }
  0xc5   : > { %649 = vmax.xlane.f32.xlu2 %v648_v54 }
 0x132   : > { %v2540_v56 = vpop.xlane.xlu1 %646 }
 0x133   : > { %v654_v59 = vperm.slane %v2540_v56, 1  ;;  %v653_v60 = vperm.slane %v2540_v56, 0  ;;  %v655_v6 = vperm.slane %v2540_v56, 2  ;;  %v656_v24 = vperm.slane %v2540_v56, 3 }
 0x134   : > { %v658_v26 = vperm.slane %v2540_v56, 5  ;;  %v657_v55 = vperm.slane %v2540_v56, 4 }
 0x135   : > { %v686_v61 = vsub.f32 %v2461_v32, %v654_v59  ;;  %v685_v62 = vsub.f32 %v2465_v36, %v653_v60  ;;  %v687_v13 = vsub.f32 %v2471_v42, %v655_v6 }
 0x136   : > { %v689_v6 = vsub.f32 %v2479_v47, %v657_v55 }
 0x137   : > { %v703_v8 = vmul.f32 1.442695, %v686_v61  ;;  %v701_v10 = vmul.f32 1.442695, %v685_v62  ;;  %v705_v23 = vmul.f32 1.442695, %v687_v13 }
 0x138   : > { %v2547_v11 = vpop.xlane.xlu2 %649 }
 0x139   : > { %2114 = vpow2.f32 %v703_v8  ;;  %v661_v12 = vperm.slane %v2547_v11, 0  ;;  %v664_v15 = vperm.slane %v2547_v11, 3  ;;  %v662_v32 = vperm.slane %v2547_v11, 1 }
 0x13a   : > { %2116 = vpow2.f32 %v701_v10  ;;  %v663_v30 = vperm.slane %v2547_v11, 2  ;;  %v667_v44 = vperm.slane %v2547_v11, 6  ;;  %v709_v8 = vmul.f32 1.442695, %v689_v6 }
 0x13b   : > { %v693_v19 = vsub.f32 %v2473_v43, %v661_v12  ;;  %v696_v21 = vsub.f32 %v582_v58, %v664_v15  ;;  %v694_v42 = vsub.f32 %v2477_v45, %v662_v32  ;;  %v688_v43 = vsub.f32 %v2469_v39, %v656_v24 }
 0x13c   : > { %v690_v58 = vsub.f32 %v2484_v52, %v658_v26  ;;  %v665_v45 = vperm.slane %v2547_v11, 4  ;;  %v695_v39 = vsub.f32 %v2492_v57, %v663_v30  ;;  %v699_v51 = vsub.f32 %v2517_v0, %v667_v44 }
 0x13d   : > { %v717_v36 = vmul.f32 1.442695, %v693_v19  ;;  %v723_v25 = vmul.f32 1.442695, %v696_v21  ;;  %v719_v29 = vmul.f32 1.442695, %v694_v42 }
 0x13e   : > { %v707_v37 = vmul.f32 1.442695, %v688_v43  ;;  %v711_v40 = vmul.f32 1.442695, %v690_v58  ;;  %v697_v52 = vsub.f32 %v2500_v63, %v665_v45  ;;  %v721_v54 = vmul.f32 1.442695, %v695_v39 }
 0x13f   : > { %v2556_v27 = vpop.eup %2114  ;;  %2118 = vpow2.f32 %v717_v36  ;;  %v659_v57 = vperm.slane %v2540_v56, 6  ;;  %v729_v61 = vmul.f32 1.442695, %v699_v51  ;;  %v666_v10 = vperm.slane %v2547_v11, 5 }
 0x140   : > { %v2559_v28 = vpop.eup %2116  ;;  %753 = vperm.xlu1 %2111, %v2556_v27   ;;  %2120 = vpow2.f32 %v705_v23  ;;  %v725_v60 = vmul.f32 1.442695, %v697_v52  ;;  %v668_v15 = vperm.slane %v2547_v11, 7  ;;  %v660_v36 = vperm.slane %v2540_v56, 7 }
 0x141   : > { %750 = vperm.xlu0 %2110, %v2559_v28   ;;  %2122 = vpow2.f32 %v723_v25  ;;  %v691_v0 = vsub.f32 %v2502_v2, %v659_v57  ;;  %v698_v19 = vsub.f32 %v2509_v17, %v666_v10 }
 0x142   : > { %2124 = vpow2.f32 %v719_v29  ;;  %v700_v2 = vsub.f32 %v2532_v41, %v668_v15  ;;  %v692_v17 = vsub.f32 %v2513_v20, %v660_v36 }
 0x143   : > { %2126 = vpow2.f32 %v707_v37  ;;  %v713_v13 = vmul.f32 1.442695, %v691_v0  ;;  %v727_v32 = vmul.f32 1.442695, %v698_v19 }
 0x144   : > { %2128 = vpow2.f32 %v711_v40  ;;  %v731_v23 = vmul.f32 1.442695, %v700_v2  ;;  %v715_v25 = vmul.f32 1.442695, %v692_v17 }
 0x145   : > { %v2566_v31 = vpop.eup %2118  ;;  %2130 = vpow2.f32 %v721_v54 }
 0x146   : > { %774 = vperm.xlu2 %2112, %v2566_v31   ;;  %v2571_v46 = vpop.eup %2120  ;;  %2132 = vpow2.f32 %v725_v60 }
 0x147   : > { %v2574_v48 = vpop.eup %2122  ;;  %2134 = vpow2.f32 %v729_v61 }
 0x148   : > { %756 = vperm.xlu1 %2111, %v2571_v46   ;;  %v2581_v59 = vpop.eup %2124  ;;  %2136 = vpow2.f32 %v709_v8 }
 0x149   : > { %783 = vperm.xlu0 %2110, %v2574_v48   ;;  %v2585_v62 = vpop.eup %2126  ;;  %2138 = vpow2.f32 %v713_v13 }
 0x14a   : > { %v2588_v63 = vpop.eup %2128  ;;  %2140 = vpow2.f32 %v727_v32 }
 0x14b   : > { %v2594_v12 = vpop.eup %2130  ;;  %2142 = vpow2.f32 %v731_v23 }
 0x14c   : > { %v2598_v47 = vpop.eup %2132  ;;  %2144 = vpow2.f32 %v715_v25 }
 0x14d   : > { %v2601_v21 = vpop.eup %2134 }
 0x14e   : > { %777 = vperm.xlu2 %2112, %v2581_v59   ;;  %v2607_v11 = vpop.eup %2136 }
 0x14f   : > { %v2610_v24 = vpop.eup %2138 }
 0x150   : > { %759 = vperm.xlu1 %2111, %v2585_v62   ;;  %v2614_v26 = vpop.eup %2140 }
 0x151   : > { %765 = vperm.xlu0 %2110, %v2588_v63   ;;  %v2617_v41 = vpop.eup %2142 }
 0x152   : > { %v2620_v56 = vpop.eup %2144 }
 0x156   : > { %780 = vperm.xlu2 %2112, %v2594_v12  }
 0x158   : > { %786 = vperm.xlu1 %2111, %v2598_v47  }
 0x159   : > { %792 = vperm.xlu0 %2110, %v2601_v21  }
 0x15e   : > { %762 = vperm.xlu2 %2112, %v2607_v11  }
 0x160   : > { %768 = vperm.xlu1 %2111, %v2610_v24  }
 0x166   : > { %789 = vperm.xlu2 %2112, %v2614_v26  }
 0x168   : > { %795 = vperm.xlu1 %2111, %v2617_v41  }
 0x16e   : > { %771 = vperm.xlu2 %2112, %v2620_v56  }
 0x1a0   : > { %v775_v42 = vpop.permute.xlu2 %774 }
 0x1a1   : > { %v805_v13 = vperm.slane %v775_v42, %v2463_v33 }
 0x1a8   : > { %v778_v43 = vpop.permute.xlu2 %777 }
 0x1a9   : > { %v806_v0 = vperm.slane %v778_v43, %v2463_v33 }
 0x1ab   : > { %v820_v17 = vsel %vm621_vm1, %v806_v0, %v805_v13 }
 0x1b0   : > { %v781_v58 = vpop.permute.xlu2 %780 }
 0x1b1   : > { %v807_v10 = vperm.slane %v781_v58, %v2463_v33 }
 0x1b2   : > { %v754_v20 = vpop.permute.xlu1 %753 }
 0x1b3   : > { %v751_v29 = vpop.permute.xlu0 %750  ;;  %v798_v39 = vperm.slane %v754_v20, %v2463_v33  ;;  %v821_v43 = vsel %vm623_vm2, %v807_v10, %v820_v17 }
 0x1b4   : > { %v797_v52 = vperm.slane %v751_v29, %v2463_v33 }
 0x1b6   : > { %v813_v60 = vsel %vm621_vm1, %v798_v39, %v797_v52 }
 0x1b8   : > { %v763_v37 = vpop.permute.xlu2 %762 }
 0x1b9   : > { %v801_v8 = vperm.slane %v763_v37, %v2463_v33 }
 0x1ba   : > { %v757_v30 = vpop.permute.xlu1 %756 }
 0x1bb   : > { %v784_v40 = vpop.permute.xlu0 %783  ;;  %v799_v51 = vperm.slane %v757_v30, %v2463_v33 }
 0x1bc   : > { %v808_v15 = vperm.slane %v784_v40, %v2463_v33 }
 0x1bd   : > { %v814_v57 = vsel %vm623_vm2, %v799_v51, %v813_v60 }
 0x1be   : > { %v822_v58 = vsel %vm625_vm3, %v808_v15, %v821_v43 }
 0x1c0   : > { %v790_v44 = vpop.permute.xlu2 %789 }
 0x1c2   : > { %v760_v45 = vpop.permute.xlu1 %759 }
 0x1c3   : > { %v800_v54 = vperm.slane %v760_v45, %v2463_v33  ;;  %v766_v61 = vpop.permute.xlu0 %765  ;;  %v810_v45 = vperm.slane %v790_v44, %v2463_v33 }
 0x1c4   : > { %v802_v32 = vperm.slane %v766_v61, %v2463_v33 }
 0x1c5   : > { %v815_v6 = vsel %vm625_vm3, %v800_v54, %v814_v57 }
 0x1c6   : > { %v816_v19 = vsel %vm627_vm4, %v801_v8, %v815_v6 }
 0x1c7   : > { %v817_v20 = vsel %vm629_vm5, %v802_v32, %v816_v19 }
 0x1c8   : > { %v772_v2 = vpop.permute.xlu2 %771 }
 0x1c9   : > { %v804_v42 = vperm.slane %v772_v2, %v2463_v33 }
 0x1ca   : > { %v787_v55 = vpop.permute.xlu1 %786 }
 0x1cb   : > { %v809_v36 = vperm.slane %v787_v55, %v2463_v33  ;;  %v793_v40 = vpop.permute.xlu0 %792 }
 0x1cc   : > { %v811_v51 = vperm.slane %v793_v40, %v2463_v33 }
 0x1cd   : > { %v823_v30 = vsel %vm627_vm4, %v809_v36, %v822_v58 }
 0x1ce   : > { %v824_v52 = vsel %vm629_vm5, %v810_v45, %v823_v30 }
 0x1cf   : > { %v825_v60 = vsel %vm631_vm6, %v811_v51, %v824_v52 }
 0x1d2   : > { %v769_v23 = vpop.permute.xlu1 %768 }
 0x1d3   : > { %v803_v25 = vperm.slane %v769_v23, %v2463_v33 }
 0x1d5   : > { %v818_v29 = vsel %vm631_vm6, %v803_v25, %v817_v20 }
 0x1d6   : > { %v819_v37 = vsel %vm633_vm7, %v804_v42, %v818_v29 }
 0x1d7   : > { %v829_v39 = vsel %vm644_vm8, %v819_v37, 0.0 }
 0x1d8   : > { %830 = vadd.xlane.f32.xlu0 %v829_v39 }
 0x1da   : > { %v796_v54 = vpop.permute.xlu1 %795 }
 0x1db   : > { %v812_v55 = vperm.slane %v796_v54, %v2463_v33 }
 0x1dd   : > { %v826_v57 = vsel %vm633_vm7, %v812_v55, %v825_v60 }
 0x1de   : > { %v832_v61 = vsel %vm644_vm8, %v826_v57, 0.0 }
 0x1df   : > { %833 = vadd.xlane.f32.xlu2 %v832_v61 }
 0x24b   : > { %v831_v6 = vpop.xlane.xlu0 %830 }
 0x24c   : > { %2146 = vrcp.f32 %v831_v6 }
 0x252   : > { %v2147_v44 = vpop.eup %2146  ;;  %v834_v0 = vpop.xlane.xlu2 %833 }
 0x253   : > { %2148 = vrcp.f32 %v834_v0  ;;  %v842_v8 = vperm.slane %v2147_v44, 3  ;;  %v839_v10 = vperm.slane %v2147_v44, 0  ;;  %v845_v19 = vperm.slane %v2147_v44, 6 }
 0x254   : > { %v840_v2 = vperm.slane %v2147_v44, 1  ;;  %v844_v25 = vperm.slane %v2147_v44, 5  ;;  %v841_v29 = vperm.slane %v2147_v44, 2 }
 0x255   : > { %v874_v13 = vmul.f32 %v2585_v62, %v842_v8  ;;  %v871_v15 = vmul.f32 %v2559_v28, %v839_v10  ;;  %v877_v23 = vmul.f32 %v2610_v24, %v845_v19 }
 0x256   : > { %v872_v17 = vmul.f32 %v2556_v27, %v840_v2  ;;  %v876_v28 = vmul.f32 %v2588_v63, %v844_v25  ;;  %v873_v30 = vmul.f32 %v2571_v46, %v841_v29 }
 0x257   : > { %904 = vperm.xlu2 %2112, %v874_v13   ;;  %889 = vperm.xlu1 %2111, %v871_v15  }
 0x259   : > { %v2149_v33 = vpop.eup %2148 }
 0x25a   : > { %v850_v32 = vperm.slane %v2149_v33, 3  ;;  %v854_v43 = vperm.slane %v2149_v33, 7  ;;  %v847_v62 = vperm.slane %v2149_v33, 0  ;;  %v848_v58 = vperm.slane %v2149_v33, 1 }
 0x25b   : > { %v849_v63 = vperm.slane %v2149_v33, 2  ;;  %v852_v46 = vperm.slane %v2149_v33, 5 }
 0x25c   : > { %v882_v36 = vmul.f32 %v2574_v48, %v850_v32  ;;  %v886_v20 = vmul.f32 %v2617_v41, %v854_v43  ;;  %v879_v42 = vmul.f32 %v2566_v31, %v847_v62  ;;  %v853_v48 = vperm.slane %v2149_v33, 6 }
 0x25d   : > { %v880_v27 = vmul.f32 %v2581_v59, %v848_v58  ;;  %v881_v41 = vmul.f32 %v2594_v12, %v849_v63  ;;  %v843_v31 = vperm.slane %v2147_v44, 4  ;;  %v851_v59 = vperm.slane %v2149_v33, 4 }
 0x25e   : > { %944 = vperm.xlu0 %2110, %v882_v36   ;;  %v885_v24 = vmul.f32 %v2601_v21, %v853_v48  ;;  %v1095_v21 = vld [vmem:[%s3027_s4] sm:$0xff]  ;;  %v884_v40 = vmul.f32 %v2614_v26, %v852_v46  ;;  %v846_v12 = vperm.slane %v2147_v44, 7 }
 0x25f   : > { %919 = vperm.xlu2 %2112, %v877_v23   ;;  %894 = vperm.xlu1 %2111, %v872_v17   ;;  %v875_v37 = vmul.f32 %v2607_v11, %v843_v31  ;;  %v883_v45 = vmul.f32 %v2598_v47, %v851_v59  ;;  %v1096_v11 = vld [vmem:[%s3027_s4 + $0x8] sm:$0xff] }
 0x260   : > { %v878_v39 = vmul.f32 %v2620_v56, %v846_v12  ;;  %v1164_v12 = vld [vmem:[%s3012_s6 + $0x30] sm:$0xff] }
 0x266   : > { %914 = vperm.xlu0 %2110, %v876_v28  }
 0x267   : > { %964 = vperm.xlu2 %2112, %v886_v20   ;;  %929 = vperm.xlu1 %2111, %v879_v42  }
 0x26e   : > { %959 = vperm.xlu0 %2110, %v885_v24  }
 0x26f   : > { %934 = vperm.xlu1 %2111, %v880_v27  }
 0x276   : > { %1131 = vrot.lane.b32.xlu0 %v1095_v21, %s2233_s13 }
 0x277   : > { %899 = vperm.xlu1 %2111, %v873_v30  }
 0x27f   : > { %939 = vperm.xlu1 %2111, %v881_v41  }
 0x287   : > { %909 = vperm.xlu1 %2111, %v875_v37  }
 0x28f   : > { %949 = vperm.xlu1 %2111, %v883_v45  }
 0x297   : > { %954 = vperm.xlu1 %2111, %v884_v40  }
 0x29f   : > { %924 = vperm.xlu1 %2111, %v878_v39   ;;  %v1165_v39 = vld [vmem:[%s3012_s6 + $0x38] sm:$0xf] }
 0x2a7   : > { %1133 = vrot.lane.b32.xlu1 %v1096_v11, %s2233_s13  ;;  %s2065_s13 = sshll.u32 %s2318_s21, 4 }
 0x2a8   : > { %s1796_s1 = scalar_lea.hbm %s3017_s11, %s2065_s13 }
 0x2a9   : > { %s1799_s4 = sshll.u32 %s1796_s1, 4  ;;  %s1800_s4 = int_to_ptr.hbm [resolvable:$true] %s1799_s4 }
 0x2aa   : > { %s2182_s16 = sshra.s32 %s1800_s4, 4  ;;  %s2183_s16 = int_to_ptr.hbm [resolvable:$true] %s2182_s16 }
 0x2ab   : > { %s2184_s21 = scalar_lea.hbm %s2183_s16, 16  ;;  %p2189_p0 = scmp.lt.s32.totalorder %s2183_s16, %s3017_s11 }
 0x2ac   : > { %p2185_p11 = scmp.ne.s32.totalorder %s2183_s16, %s2184_s21  ;;  %p2190_p1 = scmp.lt.s32.totalorder %s2188_s12, %s2184_s21 }
 0x2ae   : > { %p2186_p12 = pnand %p2185_p11, %p2335_p5  ;;  %p2191_p2 = por %p2190_p1, %p2189_p0 }
 0x2b0   : > { %p2187_p13 = pneg %p2186_p12 }
 0x2b1   : > { %v905_v55 = vpop.permute.xlu2 %904 }
 0x2b2   : > { %v970_v57 = vmul.f32 %v905_v55, %v2407_v35  ;;  %p2192_p3 = pnand %p2191_p2, %p2187_p13 }
 0x2b4   : > { %v1004_v26 = vsel %vm522_vm0, %v970_v57, 0.0 }
 0x2b5   : > { %v1005_v44 = vrot.slane %v1004_v26, 4 }
 0x2b7   : > { %v1006_v0 = vadd.f32 %v1005_v44, %v1004_v26 }
 0x2b9   : > { %v920_v61 = vpop.permute.xlu2 %919  ;;  %v1007_v33 = vrot.slane %v1006_v0, 2 }
 0x2ba   : > { %v973_v32 = vmul.f32 %v920_v61, %v2443_v5  ;;  %v1920_v61 = vld [vmem:[%s3012_s6 + $0x18] sm:$0xf] }
 0x2bc   : > { %v2695_v5 = vsel %vm522_vm0, %v973_v32, 0.0 }
 0x2bd   : > { %v1026_v41 = vrot.slane %v2695_v5, 4 }
 0x2c1   : > { %v965_v15 = vpop.permute.xlu2 %964 }
 0x2c2   : > { %v982_v36 = vmul.f32 %v965_v15, %v2456_v18 }
 0x2c9   : > { %v890_v52 = vpop.permute.xlu1 %889 }
 0x2ca   : > { %v967_v23 = vmul.f32 %v890_v52, %v2370_v4  ;;  %v2698_v4 = vsel %vm522_vm0, %v982_v36, 0.0  ;;  %v1188_v52 = vunpack.c.l.b16 %v1164_v12 }
 0x2cb   : > { %v1089_v31 = vrot.slane %v2698_v4, 4 }
 0x2cc   : > { %v983_v18 = vsel %vm522_vm0, %v967_v23, 0.0 }
 0x2d0   : > { %v945_v47 = vpop.permute.xlu0 %944 }
 0x2d1   : > { %v895_v51 = vpop.permute.xlu1 %894 }
 0x2d2   : > { %v968_v8 = vmul.f32 %v895_v51, %v2386_v16  ;;  %v978_v16 = vmul.f32 %v945_v47, %v2404_v34  ;;  %v1189_v51 = vunpack.c.h.b16 %v1164_v12 }
 0x2d4   : > { %v990_v19 = vsel %vm522_vm0, %v968_v8, 0.0  ;;  %v1198_v44 = vpack.c.b16 %v1189_v51, %v1189_v51  ;;  %v2048_v8 = vld [vmem:[%s3012_s6 + $0x1c] sm:$0xf] }
 0x2d5   : > { %v991_v25 = vrot.slane %v990_v19, 4 }
 0x2d6   : > { %v1215_v36 = vsel %vm1210_vm9, %v1198_v44, 0 }
 0x2d7   : > { %v2705_v58 = vadd.f32 %v991_v25, %v990_v19  ;;  %1239 = vmatpush.bf16.msra.mxu1 %v1215_v36 }
 0x2d8   : > { %v915_v56 = vpop.permute.xlu0 %914 }
 0x2d9   : > { %v930_v54 = vpop.permute.xlu1 %929  ;;  %v972_v24 = vmul.f32 %v915_v56, %v2422_v49  ;;  %v993_v45 = vrot.slane %v2705_v58, 2 }
 0x2da   : > { %v975_v10 = vmul.f32 %v930_v54, %v2364_v1  ;;  %v1190_v54 = vunpack.c.l.b16 %v1165_v39 }
 0x2db   : > { %v2717_v49 = vsel %vm522_vm0, %v972_v24, 0.0  ;;  %v1916_v24 = vld [vmem:[%s3012_s6 + $0x8] sm:$0xf] }
 0x2dc   : > { %v1039_v17 = vsel %vm522_vm0, %v975_v10, 0.0  ;;  %v1199_v56 = vpack.c.b16 %v1190_v54, %v1190_v54  ;;  %v1922_v10 = vld [vmem:[%s3012_s6 + $0x24] sm:$0xf0] }
 0x2dd   : > { %v1040_v62 = vrot.slane %v1039_v17, 4  ;;  %v1925_v25 = vor.u32 %v2048_v8, %v1922_v10 }
 0x2de   : > { %v1218_v23 = vsel %vm1210_vm9, %v1199_v56, 0 }
 0x2df   : > { %v2708_v30 = vadd.f32 %v1040_v62, %v1039_v17  ;;  %1253 = vmatpush.bf16.msra.mxu2 %v1218_v23  ;;  %1240 = vmatpush.bf16.msra.mxu1 %v1925_v25 }
 0x2e0   : > { %v960_v43 = vpop.permute.xlu0 %959 }
 0x2e1   : > { %v935_v60 = vpop.permute.xlu1 %934  ;;  %v981_v20 = vmul.f32 %v960_v43, %v2440_v3  ;;  %v984_v3 = vrot.slane %v983_v18, 4  ;;  %v1042_v11 = vrot.slane %v2708_v30, 2  ;;  %v1908_v43 = vld [vmem:[%s3012_s6] sm:$0xf] }
 0x2e2   : > { %v976_v2 = vmul.f32 %v935_v60, %v2383_v14 }
 0x2e3   : > { %v1081_v59 = vsel %vm522_vm0, %v981_v20, 0.0  ;;  %v1019_v20 = vrot.slane %v2717_v49, 4 }
 0x2e4   : > { %v1046_v28 = vsel %vm522_vm0, %v976_v2, 0.0  ;;  %v1082_v55 = vrot.slane %v1081_v59, 4  ;;  %v2050_v2 = vld [vmem:[%s3012_s6 + $0x28] sm:$0xf0] }
 0x2e5   : > { %v1047_v27 = vrot.slane %v1046_v28, 4 }
 0x2e7   : > { %v1048_v46 = vadd.f32 %v1047_v27, %v1046_v28  ;;  %v2047_v27 = vld [vmem:[%s3012_s6 + $0x10] sm:$0xf0] }
 0x2e9   : > { %v900_v6 = vpop.permute.xlu1 %899 }
 0x2ea   : > { %v969_v1 = vmul.f32 %v900_v6, %v2375_v7  ;;  %v1060_v7 = vsel %vm522_vm0, %v978_v16, 0.0  ;;  %v1197_v6 = vpack.c.b16 %v1188_v52, %v1188_v52 }
 0x2eb   : > { %v1061_v21 = vrot.slane %v1060_v7, 4 }
 0x2ec   : > { %v997_v42 = vsel %vm522_vm0, %v969_v1, 0.0  ;;  %v1212_v32 = vsel %vm1210_vm9, %v1197_v6, 0 }
 0x2ed   : > { %v998_v37 = vrot.slane %v997_v42, 4  ;;  %v1062_v15 = vadd.f32 %v1061_v21, %v1060_v7  ;;  %1225 = vmatpush.bf16.msra.mxu0 %v1212_v32 }
 0x2ef   : > { %v999_v60 = vadd.f32 %v998_v37, %v997_v42  ;;  %v994_v37 = vadd.f32 %v993_v45, %v2705_v58  ;;  %v1027_v58 = vadd.f32 %v1026_v41, %v2695_v5 }
 0x2f1   : > { %v940_v13 = vpop.permute.xlu1 %939  ;;  %v1000_v17 = vrot.slane %v999_v60, 2  ;;  %v1028_v8 = vrot.slane %v1027_v58, 2 }
 0x2f2   : > { %v977_v35 = vmul.f32 %v940_v13, %v2392_v22  ;;  %v2692_v22 = vadd.f32 %v1007_v33, %v1006_v0  ;;  %v2049_v0 = vld [vmem:[%s3012_s6 + $0x20] sm:$0xf0]  ;;  %v985_v13 = vadd.f32 %v984_v3, %v983_v18  ;;  %v1049_v33 = vrot.slane %v1048_v46, 2 }
 0x2f3   : > { %v1921_v1 = vor.u32 %v2049_v0, %v1920_v61  ;;  %v2045_v18 = vld [vmem:[%s3012_s6 + $0x4] sm:$0xf]  ;;  %v1043_v3 = vadd.f32 %v1042_v11, %v2708_v30  ;;  %v1001_v51 = vadd.f32 %v1000_v17, %v999_v60  ;;  %v1020_v30 = vadd.f32 %v1019_v20, %v2717_v49 }
 0x2f4   : > { %v1053_v14 = vsel %vm522_vm0, %v977_v35, 0.0  ;;  %v1009_v63 = vrot.slane %v2692_v22, 1  ;;  %v986_v7 = vrot.slane %v985_v13, 2  ;;  %v1050_v42 = vadd.f32 %v1049_v33, %v1048_v46 }
 0x2f5   : > { %v1054_v29 = vrot.slane %v1053_v14, 4  ;;  %1226 = vmatpush.bf16.msra.mxu0 %v1921_v1  ;;  %v1002_v49 = vrot.slane %v1001_v51, 1  ;;  %v1029_v20 = vadd.f32 %v1028_v8, %v1027_v58 }
 0x2f6   : > { %v987_v45 = vadd.f32 %v986_v7, %v985_v13  ;;  %v1010_v5 = vadd.f32 %v1009_v63, %v2692_v22 }
 0x2f7   : > { %v1055_v40 = vadd.f32 %v1054_v29, %v1053_v14  ;;  %v2046_v14 = vld [vmem:[%s3012_s6 + $0x8] sm:$0xf0]  ;;  %v1063_v29 = vrot.slane %v1062_v15, 2  ;;  %v1003_v36 = vadd.f32 %v1002_v49, %v1001_v51 }
 0x2f8   : > { %v1909_v46 = vor.u32 %v2046_v14, %v1908_v43  ;;  %v988_v56 = vrot.slane %v987_v45, 1 }
 0x2f9   : > { %v910_v34 = vpop.permute.xlu1 %909  ;;  %v1056_v19 = vrot.slane %v1055_v40, 2  ;;  %v1064_v61 = vadd.f32 %v1063_v29, %v1062_v15 }
 0x2fa   : > { %v971_v48 = vmul.f32 %v910_v34, %v2411_v38  ;;  %v1910_v34 = vld [vmem:[%s3012_s6 + $0xc] sm:$0xf0]  ;;  %1227 = vmatpush.bf16.msra.mxu0 %v1909_v46  ;;  %v989_v23 = vadd.f32 %v988_v56, %v987_v45  ;;  %v1030_v46 = vrot.slane %v1029_v20, 1 }
 0x2fb   : > { %v1057_v21 = vadd.f32 %v1056_v19, %v1055_v40  ;;  %v1913_v52 = vor.u32 %v2045_v18, %v1910_v34  ;;  %v1090_v40 = vadd.f32 %v1089_v31, %v2698_v4  ;;  %v1021_v4 = vrot.slane %v1020_v30, 2 }
 0x2fc   : > { %v1011_v38 = vsel %vm522_vm0, %v971_v48, 0.0  ;;  %v1065_v33 = vrot.slane %v1064_v61, 1 }
 0x2fd   : > { %v1012_v47 = vrot.slane %v1011_v38, 4  ;;  %v1058_v11 = vrot.slane %v1057_v21, 1  ;;  %1241 = vmatpush.bf16.msra.mxu1 %v1913_v52  ;;  %v1091_v10 = vrot.slane %v1090_v40, 2  ;;  %v1022_v17 = vadd.f32 %v1021_v4, %v1020_v30 }
 0x2fe   : > { %v1066_v14 = vadd.f32 %v1065_v33, %v1064_v61 }
 0x2ff   : > { %v1013_v62 = vadd.f32 %v1012_v47, %v1011_v38  ;;  %v1083_v38 = vadd.f32 %v1082_v55, %v1081_v59  ;;  %v1051_v59 = vrot.slane %v1050_v42, 1  ;;  %v1059_v13 = vadd.f32 %v1058_v11, %v1057_v21 }
 0x300   : > { %v1092_v25 = vadd.f32 %v1091_v10, %v1090_v40 }
 0x301   : > { %v950_v57 = vpop.permute.xlu1 %949  ;;  %v1014_v54 = vrot.slane %v1013_v62, 2  ;;  %v1084_v41 = vrot.slane %v1083_v38, 2  ;;  %v1052_v31 = vadd.f32 %v1051_v59, %v1050_v42  ;;  %v1031_v59 = vadd.f32 %v1030_v46, %v1029_v20 }
 0x302   : > { %v979_v26 = vmul.f32 %v950_v57, %v2425_v50  ;;  %v1928_v50 = vld [vmem:[%s3012_s6 + $0x20] sm:$0xf]  ;;  %v1917_v57 = vor.u32 %v2047_v27, %v1916_v24  ;;  %v1023_v24 = vrot.slane %v1022_v17, 1  ;;  %v1093_v21 = vrot.slane %v1092_v25, 1 }
 0x303   : > { %v1929_v28 = vor.u32 %v2050_v2, %v1928_v50  ;;  %v1015_v44 = vadd.f32 %v1014_v54, %v1013_v62  ;;  %v1085_v32 = vadd.f32 %v1084_v41, %v1083_v38 }
 0x304   : > { %v1067_v35 = vsel %vm522_vm0, %v979_v26, 0.0  ;;  %v1044_v26 = vrot.slane %v1043_v3, 1  ;;  %v1024_v54 = vadd.f32 %v1023_v24, %v1022_v17  ;;  %v1094_v58 = vadd.f32 %v1093_v21, %v1092_v25 }
 0x305   : > { %v1068_v16 = vrot.slane %v1067_v35, 4  ;;  %1254 = vmatpush.bf16.msra.mxu2 %v1929_v28  ;;  %v1016_v22 = vrot.slane %v1015_v44, 1  ;;  %v1086_v42 = vrot.slane %v1085_v32, 1 }
 0x306   : > { %v1045_v50 = vadd.f32 %v1044_v26, %v1043_v3 }
 0x307   : > { %v1069_v48 = vadd.f32 %v1068_v16, %v1067_v35  ;;  %v1087_v52 = vadd.f32 %v1086_v42, %v1085_v32  ;;  %v1152_v32 = vld [vmem:[%s3011_s5 + $0x30] sm:$0xff]  }
 0x308   : > { %v1120_v16 = vsel %vm621_vm1, %v1052_v31, %v1045_v50  ;;  %v1154_v31 = vld [vmem:[%s3011_s5 + $0x38] sm:$0xff]  }
 0x309   : > { %v1070_v12 = vrot.slane %v1069_v48, 2  ;;  %v955_v39 = vpop.permute.xlu1 %954  ;;  %1255 = vmatpush.bf16.msra.mxu2 %v1917_v57  ;;  %v1121_v43 = vsel %vm623_vm2, %v1059_v13, %v1120_v16  ;;  %v1289_v13 = vunpack.c.l.bf16 %v1154_v31  ;;  %v1287_v16 = vunpack.c.l.bf16 %v1152_v32 }
 0x30a   : > { %v980_v47 = vmul.f32 %v955_v39, %v2429_v53  ;;  %v995_v53 = vrot.slane %v994_v37, 1 }
 0x30b   : > { %v1071_v55 = vadd.f32 %v1070_v12, %v1069_v48  ;;  %v1017_v48 = vadd.f32 %v1016_v22, %v1015_v44 }
 0x30c   : > { %v1074_v60 = vsel %vm522_vm0, %v980_v47, 0.0  ;;  %v996_v19 = vadd.f32 %v995_v53, %v994_v37  ;;  %v1122_v37 = vsel %vm625_vm3, %v1066_v14, %v1121_v43 }
 0x30d   : > { %v1075_v6 = vrot.slane %v1074_v60, 4  ;;  %v1072_v15 = vrot.slane %v1071_v55, 1 }
 0x30e   : > { %v1113_v18 = vsel %vm621_vm1, %v996_v19, %v989_v23 }
 0x30f   : > { %v1076_v0 = vadd.f32 %v1075_v6, %v1074_v60  ;;  %v1073_v62 = vadd.f32 %v1072_v15, %v1071_v55  ;;  %v1132_v60 = vpop.permute.xlu0 %1131  ;;  %v1290_v15 = vunpack.c.h.bf16 %v1154_v31 }
 0x311   : > { %v1077_v2 = vrot.slane %v1076_v0, 2  ;;  %v925_v35 = vpop.permute.xlu1 %924  ;;  %v1123_v3 = vsel %vm627_vm4, %v1073_v62, %v1122_v37 }
 0x312   : > { %v974_v63 = vmul.f32 %v925_v35, %v2447_v9  ;;  %v1114_v9 = vsel %vm623_vm2, %v1003_v36, %v1113_v18 }
 0x313   : > { %v1078_v1 = vadd.f32 %v1077_v2, %v1076_v0  ;;  %v1115_v39 = vsel %vm625_vm3, %v1010_v5, %v1114_v9 }
 0x314   : > { %v1032_v28 = vsel %vm522_vm0, %v974_v63, 0.0  ;;  %v1116_v51 = vsel %vm627_vm4, %v1017_v48, %v1115_v39 }
 0x315   : > { %v1079_v34 = vrot.slane %v1078_v1, 1  ;;  %v1033_v7 = vrot.slane %v1032_v28, 4  ;;  %v1117_v30 = vsel %vm629_vm5, %v1024_v54, %v1116_v51 }
 0x316   : > { %v1118_v61 = vsel %vm631_vm6, %v1031_v59, %v1117_v30  ;;  %v1144_v30 = vld [vmem:[%s3011_s5 + $0x10] sm:$0xff]  }
 0x317   : > { %v1080_v27 = vadd.f32 %v1079_v34, %v1078_v1  ;;  %v1034_v29 = vadd.f32 %v1033_v7, %v1032_v28  ;;  %v1288_v1 = vunpack.c.h.bf16 %v1152_v32  ;;  %v1150_v7 = vld [vmem:[%s3011_s5 + $0x28] sm:$0xff]  }
 0x318   : > { %v1285_v24 = vunpack.c.l.bf16 %v1150_v7 }
 0x319   : > { %v1035_v38 = vrot.slane %v1034_v29, 2  ;;  %v1124_v12 = vsel %vm629_vm5, %v1080_v27, %v1123_v3  ;;  %v1134_v11 = vpop.permute.xlu1 %1133  ;;  %v1286_v27 = vunpack.c.h.bf16 %v1150_v7 }
 0x31a   : > { %v1125_v57 = vsel %vm631_vm6, %v1087_v52, %v1124_v12  ;;  %v1146_v52 = vld [vmem:[%s3011_s5 + $0x18] sm:$0xff]  }
 0x31b   : > { %v1036_v47 = vadd.f32 %v1035_v38, %v1034_v29  ;;  %v1126_v55 = vsel %vm633_vm7, %v1094_v58, %v1125_v57  ;;  %v1148_v29 = vld [vmem:[%s3011_s5 + $0x20] sm:$0xff]   ;;  %v1281_v58 = vunpack.c.l.bf16 %v1146_v52 }
 0x31c   : > { %v2799_v26 = vsel %vm522_vm0, %v1126_v55, %v1134_v11  ;;  %v1283_v39 = vunpack.c.l.bf16 %v1148_v29  ;;  %v1284_v46 = vunpack.c.h.bf16 %v1148_v29 }
 0x31d   : > { %v1037_v45 = vrot.slane %v1036_v47, 1 }
 0x31f   : > { %v1038_v40 = vadd.f32 %v1037_v45, %v1036_v47  ;;  %v1282_v45 = vunpack.c.h.bf16 %v1146_v52 }
 0x321   : > { %v1119_v53 = vsel %vm633_vm7, %v1038_v40, %v1118_v61  ;;  %v1279_v61 = vunpack.c.l.bf16 %v1144_v30 }
 0x322   : > { %v2802_v6 = vsel %vm522_vm0, %v1119_v53, %v1132_v60  ;;  %v1280_v53 = vunpack.c.h.bf16 %v1144_v30 }
 0x323   : > { %v1139_v5 = vpack.c.bf16 %v2799_v26, %v2802_v6 }
 0x325   : > { %1930 = vmatmul.msk.bf16.vlgmr.msra.gmra.mxu0 %vm1206_vm10, %v1139_v5  ;;  %1931 = vmatmul.msk.bf16.vlgmr.msra.gmra.mxu1 %vm1206_vm10, %v1139_v5 }
 0x326   : > { %1932 = vmatmul.msk.bf16.vlgmr.msra.gmra.mxu2 %vm1206_vm10, %v1139_v5  ;;  %v1142_v5 = vld [vmem:[%s3011_s5 + $0x8] sm:$0xff]  }
 0x327   : > { %v1278_v31 = vunpack.c.h.bf16 %v1142_v5 }
 0x3a2   : > { %v1243_v41 = vpop.f32.mrf.mxu1 }
 0x3a3   : > { %v1263_v49 = vpack.c.bf16 %v1243_v41, %v1243_v41 }
 0x3a5   : > { %v1269_v0 = vunpack.c.l.b16 %v1263_v49 }
 0x3a9   : > { %v1257_v44 = vpop.f32.mrf.mxu2 }
 0x3aa   : > { %v1245_v56 = vpop.f32.mrf.mxu1  ;;  %v1265_v33 = vpack.c.bf16 %v1257_v44, %v1257_v44 }
 0x3ab   : > { %v1264_v4 = vpack.c.bf16 %v1245_v56, %v1245_v56 }
 0x3ac   : > { %v1317_v63 = vunpack.c.l.b16 %v1265_v33 }
 0x3ad   : > { %v1270_v8 = vunpack.c.l.b16 %v1264_v4  ;;  %v1277_v4 = vunpack.c.l.bf16 %v1142_v5 }
 0x3af   : > { %v1271_v10 = vpack.c.b16 %v1270_v8, %v1269_v0  ;;  %v1140_v0 = vld [vmem:[%s3011_s5] sm:$0xff]  }
 0x3b1   : > { %v2812_v19 = vunpack.c.l.bf16 %v1271_v10  ;;  %v2814_v50 = vunpack.c.h.bf16 %v1271_v10  ;;  %v1259_v2 = vpop.f32.mrf.mxu2 }
 0x3b2   : > { %v1266_v35 = vpack.c.bf16 %v1259_v2, %v1259_v2  ;;  %v1275_v2 = vunpack.c.l.bf16 %v1140_v0 }
 0x3b3   : > { %v1305_v36 = vmul.f32 %v1289_v13, %v2812_v19  ;;  %v1306_v22 = vmul.f32 %v1290_v15, %v2814_v50  ;;  %v1303_v28 = vmul.f32 %v1287_v16, %v2812_v19  ;;  %v1304_v14 = vmul.f32 %v1288_v1, %v2814_v50 }
 0x3b4   : > { %v1318_v23 = vunpack.c.l.b16 %v1266_v35  ;;  %v1301_v38 = vmul.f32 %v1285_v24, %v2812_v19  ;;  %v1302_v12 = vmul.f32 %v1286_v27, %v2814_v50  ;;  %v1299_v55 = vmul.f32 %v1283_v39, %v2812_v19 }
 0x3b5   : > { %v1314_v17 = vpack.c.bf16 %v1306_v22, %v1305_v36  ;;  %v1313_v48 = vpack.c.bf16 %v1304_v14, %v1303_v28  ;;  %v1300_v60 = vmul.f32 %v1284_v46, %v2814_v50  ;;  %v1298_v33 = vmul.f32 %v1282_v45, %v2814_v50 }
 0x3b6   : > { %v1319_v25 = vpack.c.b16 %v1318_v23, %v1317_v63  ;;  %v1312_v57 = vpack.c.bf16 %v1302_v12, %v1301_v38  ;;  %v1276_v35 = vunpack.c.h.bf16 %v1140_v0  ;;  %v1294_v28 = vmul.f32 %v1278_v31, %v2814_v50  ;;  %v2040_v38 = vld [vmem:[%s3011_s5 + $0x18] sm:$0xff]  ;;  %v2039_v12 = vld [vmem:[%s3011_s5 + $0x10] sm:$0xff]  ;;  %v2052_v0 = vld [vmem:[%s3013_s7 + $0x8] sm:$0xff] }
 0x3b7   : > { %1347 = vmatpush.bf16.xpose.msra.mxu3 %v1314_v17  ;;  %v1311_v56 = vpack.c.bf16 %v1300_v60, %v1299_v55  ;;  %v1295_v17 = vmul.f32 %v1279_v61, %v2812_v19  ;;  %v2056_v55 = vld [vmem:[%s3013_s7 + $0x28] sm:$0xff]  ;;  %v2055_v60 = vld [vmem:[%s3013_s7 + $0x20] sm:$0xff] }
 0x3b8   : > { %v1321_v43 = vunpack.c.l.bf16 %v1319_v25  ;;  %v1322_v62 = vunpack.c.h.bf16 %v1319_v25  ;;  %v1293_v25 = vmul.f32 %v1277_v4, %v2812_v19 }
 0x3ba   : > { %v1337_v18 = vmul.f32 %v1321_v43, %v1289_v13  ;;  %v1338_v34 = vmul.f32 %v1322_v62, %v1290_v15  ;;  %v1335_v42 = vmul.f32 %v1321_v43, %v1287_v16  ;;  %v1336_v9 = vmul.f32 %v1322_v62, %v1288_v1 }
 0x3bb   : > { %v1333_v3 = vmul.f32 %v1321_v43, %v1285_v24  ;;  %v1334_v21 = vmul.f32 %v1322_v62, %v1286_v27  ;;  %v1331_v54 = vmul.f32 %v1321_v43, %v1283_v39  ;;  %v1332_v47 = vmul.f32 %v1322_v62, %v1284_v46  ;;  %v2038_v39 = vld [vmem:[%s3011_s5 + $0x8] sm:$0xff]  ;;  %v2037_v46 = vld [vmem:[%s3011_s5] sm:$0xff] }
 0x3bc   : > { %v1346_v20 = vpack.c.bf16 %v1338_v34, %v1337_v18  ;;  %v1345_v37 = vpack.c.bf16 %v1336_v9, %v1335_v42  ;;  %v1329_v40 = vmul.f32 %v1321_v43, %v1281_v58  ;;  %v1330_v11 = vmul.f32 %v1322_v62, %v1282_v45  ;;  %v1229_v18 = vpop.f32.mrf.mxu0  ;;  %v2044_v42 = vld [vmem:[%s3011_s5 + $0x38] sm:$0xff]  ;;  %v2113_v9 = vld [vmem:[%s433_s14] ss:$0 sm:$0xff] }
 0x3bd   : > { %v1344_v51 = vpack.c.bf16 %v1334_v21, %v1333_v3  ;;  %v1343_v59 = vpack.c.bf16 %v1332_v47, %v1331_v54  ;;  %v1327_v49 = vmul.f32 %v1321_v43, %v1279_v61  ;;  %v1328_v44 = vmul.f32 %v1322_v62, %v1280_v53  ;;  %1428 = vmatpush.bf16.msrb.mxu0 %v2044_v42  ;;  %v2041_v21 = vld [vmem:[%s3011_s5 + $0x20] sm:$0xff] }
 0x3be   : > { %1447 = vmatpush.bf16.msrb.mxu1 %v1346_v20  ;;  %v1342_v41 = vpack.c.bf16 %v1330_v11, %v1329_v40  ;;  %v1325_v10 = vmul.f32 %v1321_v43, %v1277_v4  ;;  %v1326_v13 = vmul.f32 %v1322_v62, %v1278_v31  ;;  %v1297_v15 = vmul.f32 %v1281_v58, %v2812_v19  ;;  %v2058_v40 = vld [vmem:[%s3013_s7 + $0x38] sm:$0xff]  ;;  %v2057_v11 = vld [vmem:[%s3013_s7 + $0x30] sm:$0xff] }
 0x3bf   : > { %1348 = vmatpush.bf16.xpose.msra.mxu3 %v1313_v48  ;;  %v1341_v8 = vpack.c.bf16 %v1328_v44, %v1327_v49  ;;  %v1323_v36 = vmul.f32 %v1321_v43, %v1275_v2  ;;  %v1324_v22 = vmul.f32 %v1322_v62, %v1276_v35  ;;  %v1296_v16 = vmul.f32 %v1280_v53, %v2814_v50  ;;  %v2054_v53 = vld [vmem:[%s3013_s7 + $0x18] sm:$0xff]  ;;  %v2053_v31 = vld [vmem:[%s3013_s7 + $0x10] sm:$0xff] }
 0x3c0   : > { %v1340_v32 = vpack.c.bf16 %v1326_v13, %v1325_v10  ;;  %v1310_v63 = vpack.c.bf16 %v1298_v33, %v1297_v15  ;;  %v1308_v14 = vpack.c.bf16 %v1294_v28, %v1293_v25  ;;  %v1291_v43 = vmul.f32 %v1275_v2, %v2812_v19  ;;  %v2043_v19 = vld [vmem:[%s3011_s5 + $0x30] sm:$0xff]  ;;  %1526 = vmatpush.bf16.msrb.mxu2 %v2058_v40 }
 0x3c1   : > { %v1339_v23 = vpack.c.bf16 %v1324_v22, %v1323_v36  ;;  %v1309_v1 = vpack.c.bf16 %v1296_v16, %v1295_v17  ;;  %v1292_v62 = vmul.f32 %v1276_v35, %v2814_v50  ;;  %1429 = vmatpush.bf16.msrb.mxu0 %v2043_v19  ;;  %v2042_v50 = vld [vmem:[%s3011_s5 + $0x28] sm:$0xff] }
 0x3c2   : > { %1448 = vmatpush.bf16.msrb.mxu1 %v1345_v37 }
 0x3c3   : > { %v1307_v34 = vpack.c.bf16 %v1292_v62, %v1291_v43 }
 0x3c4   : > { %v1231_v7 = vpop.f32.mrf.mxu0  ;;  %1527 = vmatpush.bf16.msrb.mxu2 %v2057_v11 }
 0x3c5   : > { %v1262_v20 = vpack.c.bf16 %v1231_v7, %v1229_v18  ;;  %1430 = vmatpush.bf16.msrb.mxu0 %v2042_v50 }
 0x3c6   : > { %1449 = vmatpush.bf16.msrb.mxu1 %v1344_v51 }
 0x3c7   : > { %1349 = vmatpush.bf16.xpose.msra.mxu3 %v1312_v57 }
 0x3c8   : > { %1528 = vmatpush.bf16.msrb.mxu2 %v2056_v55  ;;  %v2934_v55 = vld [vmem:[%s3016_s10] sm:$0x3f] }
 0x3c9   : > { %1431 = vmatpush.bf16.msrb.mxu0 %v2041_v21 }
 0x3ca   : > { %1450 = vmatpush.bf16.msrb.mxu1 %v1343_v59 }
 0x3cc   : > { %1529 = vmatpush.bf16.msrb.mxu2 %v2055_v60 }
 0x3cd   : > { %1432 = vmatpush.bf16.msrb.mxu0 %v2040_v38 }
 0x3ce   : > { %1451 = vmatpush.bf16.msrb.mxu1 %v1342_v41 }
 0x3cf   : > { %1350 = vmatpush.bf16.xpose.msra.mxu3 %v1311_v56 }
 0x3d0   : > { %1530 = vmatpush.bf16.msrb.mxu2 %v2054_v53 }
 0x3d1   : > { %1433 = vmatpush.bf16.msrb.mxu0 %v2039_v12  ;;  %v2060_v12 = vld [vmem:[%s3014_s8 + $0x8] sm:$0xff] }
 0x3d2   : > { %1452 = vmatpush.bf16.msrb.mxu1 %v1341_v8  ;;  %v2051_v8 = vld [vmem:[%s3013_s7] sm:$0xff] }
 0x3d4   : > { %1531 = vmatpush.bf16.msrb.mxu2 %v2053_v31 }
 0x3d5   : > { %1434 = vmatpush.bf16.msrb.mxu0 %v2038_v39 }
 0x3d6   : > { %1453 = vmatpush.bf16.msrb.mxu1 %v1340_v32 }
 0x3d7   : > { %1351 = vmatpush.bf16.xpose.msra.mxu3 %v1310_v63  ;;  %v2234_v63 = vmov 40.0  }
 0x3d8   : > { %1532 = vmatpush.bf16.msrb.mxu2 %v2052_v0 }
 0x3d9   : > { %1435 = vmatpush.bf16.msrb.mxu0 %v2037_v46 }
 0x3da   : > { %1454 = vmatpush.bf16.msrb.mxu1 %v1339_v23 }
 0x3dc   : > { %1533 = vmatpush.bf16.msrb.mxu2 %v2051_v8 }
 0x3df   : > { %1352 = vmatpush.bf16.xpose.msra.mxu3 %v1309_v1 }
 0x3e7   : > { %1353 = vmatpush.bf16.xpose.msra.mxu3 %v1308_v14 }
 0x3ef   : > { %1354 = vmatpush.bf16.xpose.msra.mxu3 %v1307_v34 }
 0x3f6   : > { %1355 = vmatmul.bf16.vlgmr.msra.gmra.mxu3 %v1262_v20 }
 0x479   : > { %v1356_v48 = vpop.f32.mrf.mxu3 }
 0x47a   : > { %v1361_v24 = vmul.f32 0.25, %v1356_v48  ;;  %v1605_v48 = vld [vmem:[%s3014_s8 + $0x10] sm:$0xf] }
 0x47c   : > { %v1367_v27 = vadd.f32 %v2113_v9, %v1361_v24  ;;  %v1616_v24 = vunpack.c.l.b16 %v1605_v48 }
 0x47e   : > { %1369 = vmax.xlane.f32.xlu2 %v1367_v27 }
 0x481   : > { %v1358_v29 = vpop.f32.mrf.mxu3 }
 0x482   : > { %v1362_v37 = vmul.f32 0.25, %v1358_v29  ;;  %v2010_v29 = vld [vmem:[%s3014_s8 + $0x24] sm:$0xf] }
 0x483   : > { %v1661_v21 = vunpack.c.l.b16 %v2010_v29 }
 0x484   : > { %v1368_v3 = vadd.f32 %v2113_v9, %v1362_v37 }
 0x485   : > { %v1664_v39 = vpack.c.b16 %v1661_v21, %v1661_v21  ;;  %v1744_v21 = vld [vmem:[%s3015_s9 + $0x10] sm:$0xf] }
 0x486   : > { %1371 = vmax.xlane.f32.xlu0 %v1368_v3 }
 0x4f1   : > { %v1370_v52 = vpop.xlane.xlu2 %1369 }
 0x4f2   : > { %v1373_v51 = vsub.f32 %v1367_v27, %v1370_v52  ;;  %v1619_v27 = vpack.c.b16 %v1616_v24, %v1616_v24 }
 0x4f4   : > { %v1375_v54 = vmul.f32 1.442695, %v1373_v51 }
 0x4f6   : > { %2150 = vpow2.f32 %v1375_v54  ;;  %v1671_v54 = vsel %vm1210_vm9, %v1664_v39, 0 }
 0x4f7   : > { %1678 = vmatpush.bf16.msra.mxu1 %v1671_v54 }
 0x4f9   : > { %v1372_v47 = vpop.xlane.xlu0 %1371 }
 0x4fa   : > { %v1374_v57 = vsub.f32 %v1368_v3, %v1372_v47  ;;  %v1626_v3 = vsel %vm1210_vm9, %v1619_v27, 0  ;;  %v2059_v47 = vld [vmem:[%s3014_s8] sm:$0xff] }
 0x4fb   : > { %1633 = vmatpush.bf16.msra.mxu0 %v1626_v3 }
 0x4fc   : > { %v1377_v58 = vmul.f32 1.442695, %v1374_v57  ;;  %v2151_v45 = vpop.eup %2150 }
 0x4fe   : > { %2152 = vpow2.f32 %v1377_v58 }
 0x4ff   : > { %1634 = vmatpush.bf16.msra.mxu0 %v2060_v12 }
 0x503   : > { %1635 = vmatpush.bf16.msra.mxu0 %v2059_v47 }
 0x504   : > { %v2153_v30 = vpop.eup %2152 }
 0x505   : > { %v1379_v59 = vpack.c.bf16 %v2153_v30, %v2151_v45 }
 0x507   : > { %1436 = vmatmul.bf16.vlgmr.msrb.gmra.mxu0 %v1379_v59 }
 0x584   : > { %v1437_v61 = vpop.f32.mrf.mxu0 }
 0x585   : > { %2154 = vrcp.f32 %v1437_v61 }
 0x58b   : > { %v2155_v41 = vpop.eup %2154 }
 0x58c   : > { %v1439_v5 = vpop.f32.mrf.mxu0  ;;  %v1444_v44 = vmul.f32 %v2155_v41, %v2151_v45 }
 0x58d   : > { %2156 = vrcp.f32 %v1439_v5  ;;  %v1594_v5 = vperm.slane %v2934_v55, 0 }
 0x58e   : > { %2158 = vrcp.f32 %v2234_v63 }
 0x593   : > { %v2157_v49 = vpop.eup %2156 }
 0x594   : > { %v1445_v56 = vmul.f32 %v2157_v49, %v2153_v30  ;;  %v2159_v23 = vpop.eup %2158 }
 0x595   : > { %v1550_v17 = vmul.f32 40.0, %v2159_v23  ;;  %vm1554_vm11 = vweird.f32 %v2159_v23 }
 0x596   : > { %v1446_v4 = vpack.c.bf16 %v1445_v56, %v1444_v44  ;;  %v1597_v56 = vperm.slane %v2934_v55, 1 }
 0x597   : > { %v1551_v16 = vsub.f32 1.0, %v1550_v17 }
 0x598   : > { %1455 = vmatmul.bf16.vlgmr.msrb.gmra.mxu1 %v1446_v4 }
 0x599   : > { %v1552_v1 = vmul.f32 %v2159_v23, %v1551_v16  ;;  %v1651_v16 = vperm.slane %v2934_v55, 5 }
 0x59b   : > { %v1553_v25 = vadd.f32 %v2159_v23, %v1552_v1 }
 0x59d   : > { %v2909_v28 = vsel %vm1554_vm11, %v2159_v23, %v1553_v25 }
 0x615   : > { %v1456_v10 = vpop.f32.mrf.mxu1 }
 0x61d   : > { %v1458_v13 = vpop.f32.mrf.mxu1 }
 0x61e   : > { %v1461_v15 = vpack.c.bf16 %v1458_v13, %v1456_v10 }
 0x620   : > { %1534 = vmatmul.bf16.vlgmr.msrb.gmra.mxu2 %v1461_v15  ;;  %v2062_v15 = vld [vmem:[%s3014_s8 + $0x1c] sm:$0xff] }
 0x621   : > { %1679 = vmatpush.bf16.msra.mxu1 %v2062_v15 }
 0x6a3   : > { %v1535_v33 = vpop.f32.mrf.mxu2 }
 0x6a4   : > { %v1541_v2 = vadd.f32 %v1535_v33, %v2802_v6  ;;  %v2061_v33 = vld [vmem:[%s3014_s8 + $0x14] sm:$0xff] }
 0x6a5   : > { %1680 = vmatpush.bf16.msra.mxu1 %v2061_v33  ;;  %v1745_v33 = vld [vmem:[%s438_s25] sm:$0xff] }
 0x6a6   : > { %v1543_v35 = vsel %vm1206_vm10, %v1541_v2, 0.0 }
 0x6a7   : > { %1544 = vadd.xlane.f32.xlu1 %v1543_v35  ;;  %v1606_v35 = vperm.slane %v2934_v55, 4 }
 0x6ab   : > { %v1537_v32 = vpop.f32.mrf.mxu2 }
 0x6ac   : > { %v1542_v36 = vadd.f32 %v1537_v32, %v2799_v26 }
 0x6ae   : > { %v1546_v22 = vsel %vm1206_vm10, %v1542_v36, 0.0 }
 0x6af   : > { %1547 = vadd.xlane.f32.xlu2 %v1546_v22 }
 0x71a   : > { %v1545_v6 = vpop.xlane.xlu1 %1544 }
 0x71b   : > { %v1556_v14 = vmul.f32 %v2909_v28, %v1545_v6 }
 0x71d   : > { %v1558_v18 = vsub.f32 %v1541_v2, %v1556_v14 }
 0x71f   : > { %v1560_v43 = vmul.f32 %v1558_v18, %v1558_v18 }
 0x721   : > { %v1562_v26 = vsel %vm1206_vm10, %v1560_v43, 0.0 }
 0x722   : > { %1563 = vadd.xlane.f32.xlu0 %v1562_v26  ;;  %v1548_v62 = vpop.xlane.xlu2 %1547 }
 0x723   : > { %v1557_v34 = vmul.f32 %v2909_v28, %v1548_v62 }
 0x725   : > { %v1559_v7 = vsub.f32 %v1542_v36, %v1557_v34 }
 0x727   : > { %v1561_v20 = vmul.f32 %v1559_v7, %v1559_v7 }
 0x729   : > { %v1565_v42 = vsel %vm1206_vm10, %v1561_v20, 0.0 }
 0x72a   : > { %1566 = vadd.xlane.f32.xlu2 %v1565_v42 }
 0x795   : > { %v1564_v19 = vpop.xlane.xlu0 %1563 }
 0x796   : > { %v1568_v50 = vmul.f32 %v1564_v19, %v2909_v28 }
 0x798   : > { %v1570_v9 = vadd.f32 1e-05, %v1568_v50 }
 0x79a   : > { %2160 = vrsqrt.f32 %v1570_v9  ;;  %vm1578_vm13 = vweird.f32 %v1570_v9 }
 0x79d   : > { %v1567_v37 = vpop.xlane.xlu2 %1566 }
 0x79e   : > { %v1569_v38 = vmul.f32 %v1567_v37, %v2909_v28 }
 0x7a0   : > { %v2161_v46 = vpop.eup %2160  ;;  %v1571_v52 = vadd.f32 1e-05, %v1569_v38  ;;  %v1756_v38 = vunpack.c.l.b16 %v1744_v21 }
 0x7a1   : > { %v1573_v51 = vmul.f32 %v2161_v46, %v1570_v9  ;;  %vm1579_vm12 = vweird.f32 %v2161_v46 }
 0x7a2   : > { %2162 = vrsqrt.f32 %v1571_v52  ;;  %vm1580_vm14 = vmor %vm1578_vm13, %vm1579_vm12  ;;  %vm1588_vm0 = vweird.f32 %v1571_v52  ;;  %v1759_v12 = vpack.c.b16 %v1756_v38, %v1756_v38 }
 0x7a3   : > { %v1574_v57 = vmul.f32 %v2161_v46, %v1573_v51  ;;  %v2064_v51 = vld [vmem:[%s3015_s9 + $0x8] sm:$0xff] }
 0x7a5   : > { %v1575_v58 = vmul.f32 0.5, %v1574_v57 }
 0x7a7   : > { %v1576_v45 = vsub.f32 1.5, %v1575_v58  ;;  %v2063_v58 = vld [vmem:[%s3015_s9] sm:$0xff] }
 0x7a8   : > { %v2163_v30 = vpop.eup %2162 }
 0x7a9   : > { %v1577_v59 = vmul.f32 %v2161_v46, %v1576_v45  ;;  %v1583_v40 = vmul.f32 %v2163_v30, %v1571_v52  ;;  %vm1589_vm15 = vweird.f32 %v2163_v30 }
 0x7aa   : > { %vm1590_vm1 = vmor %vm1588_vm0, %vm1589_vm15 }
 0x7ab   : > { %v1584_v11 = vmul.f32 %v2163_v30, %v1583_v40  ;;  %v1581_v60 = vsel %vm1580_vm14, %v2161_v46, %v1577_v59  ;;  %v1766_v46 = vsel %vm1210_vm9, %v1759_v12, 0 }
 0x7ac   : > { %v1592_v41 = vmul.f32 %v1581_v60, %v1558_v18  ;;  %1773 = vmatpush.bf16.msra.mxu2 %v1766_v46 }
 0x7ad   : > { %v1585_v61 = vmul.f32 0.5, %v1584_v11 }
 0x7ae   : > { %v1595_v4 = vmul.f32 %v1594_v5, %v1592_v41  ;;  %v1733_v41 = vperm.slane %v2934_v55, 2 }
 0x7af   : > { %v1586_v53 = vsub.f32 1.5, %v1585_v61 }
 0x7b0   : > { %v1598_v8 = vadd.f32 %v1597_v56, %v1595_v4  ;;  %1774 = vmatpush.bf16.msra.mxu2 %v2064_v51  ;;  %v1736_v4 = vperm.slane %v2934_v55, 3  ;;  %v1746_v55 = vld [vmem:[%s438_s25 + $0x8] sm:$0xff] }
 0x7b1   : > { %v1587_v49 = vmul.f32 %v2163_v30, %v1586_v53 }
 0x7b3   : > { %v1591_v44 = vsel %vm1590_vm1, %v2163_v30, %v1587_v49 }
 0x7b4   : > { %v1593_v31 = vmul.f32 %v1591_v44, %v1559_v7  ;;  %1775 = vmatpush.bf16.msra.mxu2 %v2063_v58 }
 0x7b6   : > { %v1596_v0 = vmul.f32 %v1594_v5, %v1593_v31 }
 0x7b8   : > { %v1599_v10 = vadd.f32 %v1597_v56, %v1596_v0 }
 0x7ba   : > { %v1600_v13 = vpack.c.bf16 %v1599_v10, %v1598_v8 }
 0x7bc   : > { %2005 = vmatmul.msk.bf16.vlgmr.msra.gmra.mxu0 %vm1206_vm10, %v1600_v13 }
 0x839   : > { %v1637_v2 = vpop.f32.mrf.mxu0 }
 0x83a   : > { %v1638_v32 = vadd.f32 %v1637_v2, %v1606_v35 }
 0x83c   : > { %v1642_v63 = vmax.f32 %v1638_v32, 0.0 }
 0x841   : > { %v1639_v36 = vpop.f32.mrf.mxu0 }
 0x842   : > { %v1640_v22 = vadd.f32 %v1639_v36, %v1606_v35 }
 0x844   : > { %v1643_v23 = vmax.f32 %v1640_v22, 0.0 }
 0x846   : > { %v1644_v17 = vpack.c.bf16 %v1643_v23, %v1642_v63 }
 0x848   : > { %2019 = vmatmul.msk.bf16.vlgmr.msra.gmra.mxu1 %vm1206_vm10, %v1644_v17 }
 0x8c5   : > { %v1682_v1 = vpop.f32.mrf.mxu1 }
 0x8c6   : > { %v1683_v25 = vadd.f32 %v1682_v1, %v1651_v16 }
 0x8c8   : > { %v1687_v6 = vadd.f32 %v1683_v25, %v1598_v8 }
 0x8ca   : > { %v1689_v14 = vsel %vm1206_vm10, %v1687_v6, 0.0 }
 0x8cb   : > { %1690 = vadd.xlane.f32.xlu1 %v1689_v14 }
 0x8cd   : > { %v1684_v18 = vpop.f32.mrf.mxu1 }
 0x8ce   : > { %v1685_v43 = vadd.f32 %v1684_v18, %v1651_v16 }
 0x8d0   : > { %v1688_v26 = vadd.f32 %v1685_v43, %v1599_v10 }
 0x8d2   : > { %v1692_v62 = vsel %vm1206_vm10, %v1688_v26, 0.0 }
 0x8d3   : > { %1693 = vadd.xlane.f32.xlu0 %v1692_v62 }
 0x93e   : > { %v1691_v34 = vpop.xlane.xlu1 %1690 }
 0x93f   : > { %v1695_v7 = vmul.f32 %v1691_v34, %v2909_v28 }
 0x941   : > { %v1697_v20 = vsub.f32 %v1687_v6, %v1695_v7 }
 0x943   : > { %v1699_v42 = vmul.f32 %v1697_v20, %v1697_v20 }
 0x945   : > { %v1701_v19 = vsel %vm1206_vm10, %v1699_v42, 0.0 }
 0x946   : > { %v1694_v50 = vpop.xlane.xlu0 %1693  ;;  %1702 = vadd.xlane.f32.xlu2 %v1701_v19 }
 0x947   : > { %v1696_v9 = vmul.f32 %v1694_v50, %v2909_v28 }
 0x949   : > { %v1698_v48 = vsub.f32 %v1688_v26, %v1696_v9 }
 0x94b   : > { %v1700_v24 = vmul.f32 %v1698_v48, %v1698_v48 }
 0x94d   : > { %v1704_v27 = vsel %vm1206_vm10, %v1700_v24, 0.0 }
 0x94e   : > { %1705 = vadd.xlane.f32.xlu1 %v1704_v27 }
 0x9b9   : > { %v1703_v29 = vpop.xlane.xlu2 %1702 }
 0x9ba   : > { %v1707_v37 = vmul.f32 %v1703_v29, %v2909_v28 }
 0x9bc   : > { %v1709_v3 = vadd.f32 1e-05, %v1707_v37 }
 0x9be   : > { %2164 = vrsqrt.f32 %v1709_v3  ;;  %vm1717_vm3 = vweird.f32 %v1709_v3 }
 0x9c1   : > { %v1706_v39 = vpop.xlane.xlu1 %1705 }
 0x9c2   : > { %v1708_v52 = vmul.f32 %v1706_v39, %v2909_v28 }
 0x9c4   : > { %v2165_v54 = vpop.eup %2164  ;;  %v1710_v47 = vadd.f32 1e-05, %v1708_v52 }
 0x9c5   : > { %v1712_v57 = vmul.f32 %v2165_v54, %v1709_v3  ;;  %vm1718_vm2 = vweird.f32 %v2165_v54 }
 0x9c6   : > { %2166 = vrsqrt.f32 %v1710_v47  ;;  %vm1719_vm4 = vmor %vm1717_vm3, %vm1718_vm2  ;;  %vm1727_vm6 = vweird.f32 %v1710_v47 }
 0x9c7   : > { %v1713_v45 = vmul.f32 %v2165_v54, %v1712_v57 }
 0x9c9   : > { %v1714_v30 = vmul.f32 0.5, %v1713_v45 }
 0x9cb   : > { %v1715_v59 = vsub.f32 1.5, %v1714_v30 }
 0x9cc   : > { %v2167_v40 = vpop.eup %2166 }
 0x9cd   : > { %v1716_v28 = vmul.f32 %v2165_v54, %v1715_v59  ;;  %v1722_v11 = vmul.f32 %v2167_v40, %v1710_v47  ;;  %vm1728_vm5 = vweird.f32 %v2167_v40 }
 0x9ce   : > { %vm1729_vm7 = vmor %vm1727_vm6, %vm1728_vm5 }
 0x9cf   : > { %v1723_v60 = vmul.f32 %v2167_v40, %v1722_v11  ;;  %v1720_v61 = vsel %vm1719_vm4, %v2165_v54, %v1716_v28 }
 0x9d0   : > { %v1731_v49 = vmul.f32 %v1720_v61, %v1697_v20 }
 0x9d1   : > { %v1724_v53 = vmul.f32 0.5, %v1723_v60 }
 0x9d2   : > { %v1734_v31 = vmul.f32 %v1733_v41, %v1731_v49 }
 0x9d3   : > { %v1725_v5 = vsub.f32 1.5, %v1724_v53 }
 0x9d4   : > { %v1737_v10 = vadd.f32 %v1736_v4, %v1734_v31 }
 0x9d5   : > { %v1726_v44 = vmul.f32 %v2167_v40, %v1725_v5 }
 0x9d7   : > { %v1730_v56 = vsel %vm1729_vm7, %v2167_v40, %v1726_v44 }
 0x9d8   : > { %v1732_v0 = vmul.f32 %v1730_v56, %v1698_v48 }
 0x9da   : > { %v1735_v8 = vmul.f32 %v1733_v41, %v1732_v0 }
 0x9dc   : > { %v1738_v13 = vadd.f32 %v1736_v4, %v1735_v8 }
 0x9de   : > { %v1739_v15 = vpack.c.bf16 %v1738_v13, %v1737_v10 }
 0x9e0   : > { %2028 = vmatmul.msk.bf16.vlgmr.msra.gmra.mxu2 %vm1206_vm10, %v1739_v15 }
 0xa63   : > { %v1777_v2 = vpop.f32.mrf.mxu2 }
 0xa64   : > { %v1778_v35 = vadd.f32 %v1777_v2, %v1745_v33 }
 0xa66   : > { %1782 = vst [vmem:[%s420_s15] sm:$0xff] %v1778_v35 }
 0xa6b   : > { %v1779_v32 = vpop.f32.mrf.mxu2 }
 0xa6c   : > { %v1780_v36 = vadd.f32 %v1779_v32, %v1746_v55 }
 0xa6e   : > { %1783 = vst [vmem:[%s420_s15 + $0x8] sm:$0xff] %v1780_v36 }
 0xa6f   : > { %2195 = shalt.err (!%p2192_p3)
}
 0xa70   : > { %s2235_s1 = smov 128   ;;  %s2236_s30 = smov 8  }
 0xa71   : > { %2066 = dma.vmem_to_hbm [thread:$0]  (%p2335_p5), %s1798_s2, 256, %s1800_s4, %s1785_s29, %s2235_s1, %s2235_s1, %s2236_s30  }
 0xa72 PF: > { %p2072_p4 = scmp.ge.s32.totalorder %s2230_s20, 2  ;;  %s1814_s15 = sand.u32 1, %s2218_s17  }
 0xa73   : > { %s1815_s0 = scalar_lea.sflag [#allocation3], %s1814_s15 }
 0xa74   : > { %p2069_p7 = pnand %p2072_p4, %p2339_p6 }
 0xa76   : > { %p2070_p8 = pneg %p2069_p7 }
 0xa78   : > { %2213 = dma.done.wait (%p2070_p8), %s1815_s0, 256  }
 0xa79   : > { %2215 = vsyncadd (%p2070_p8), %s1815_s0, 4294967040  ;;  %p21_p9 = scmp.ge.s32.totalorder %s2322_s23, 4   ;;  %s3030_s17 = smov %s2222_s18 }
 0xa7a   : > { %s3031_s18 = smov %s2226_s19  ;;  %s3032_s19 = smov %s2333_s26 }
 0xa7b   : > { %s3033_s20 = smov %s2322_s23  ;;  %23 = sbr.rel (!%p21_p9) target bundleno = 8 (0x8), region = 109 }
 0xa80   :  { %1821 = vsyncpa [#allocation3], 1 }
 0xa81   :  { %1823 = vsyncpa [#allocation3 + $0x1], 1 }

</bundles_post_ra>
